<compile_context>
chip_gen: v6e
topology: v6e:2x2x1
jax: 0.10.0
libtpu: 0.0.40
codegen_flags: <defaults>
</compile_context>

<pallas_src>
import numpy as np
import jax
import jax.numpy as jnp
from jax.experimental import pallas as pl
from jax.experimental.pallas import tpu as pltpu


# ----------------------------------------------------------------------------
# LMU state-space matrices: cont2discrete(..., method='zoh'), no scipy needed.
# ----------------------------------------------------------------------------
def _expm(M):
    """Matrix exponential via scaling-and-squaring + Taylor series (float64)."""
    n1 = np.linalg.norm(M, 1)
    s = 0 if n1 <= 0.5 else int(np.ceil(np.log2(n1 / 0.5)))
    A = M / (2.0 ** s)
    E = np.eye(M.shape[0], dtype=np.float64)
    term = np.eye(M.shape[0], dtype=np.float64)
    for k in range(1, 30):
        term = term @ A / k
        E = E + term
    for _ in range(s):
        E = E @ E
    return E


def state_space_matrices(memory_size, theta):
    """Discretized (A, B) exactly as LMUFFT.stateSpaceMatrices (zoh, dt=1), float64."""
    Q = np.arange(memory_size, dtype=np.float64).reshape(-1, 1)
    R = (2 * Q + 1) / theta
    i, j = np.meshgrid(Q, Q, indexing="ij")
    A = R * np.where(i < j, -1, (-1.0) ** (i - j + 1))
    B = R * (-1.0) ** Q
    n = memory_size
    aug = np.zeros((n + 1, n + 1), dtype=np.float64)  # [[A, B], [0, 0]] * dt
    aug[:n, :n] = A
    aug[:n, n:] = B
    exp_aug = _expm(aug)
    Ad = exp_aug[:n, :n]
    Bd = exp_aug[:n, n:]
    return Ad, Bd


def impulse(A, B, seq_len):
    """H = [B, AB, A^2B, ...] of shape [memory_size, seq_len] (float64)."""
    memory_size = A.shape[0]
    A = np.asarray(A, np.float64)
    B = np.asarray(B, np.float64)
    H = []
    A_i = np.eye(memory_size, dtype=np.float64)
    for _ in range(seq_len):
        H.append(A_i @ B)
        A_i = A @ A_i
    return np.concatenate(H, axis=-1)


def _round_up(x, m):
    return (x + m - 1) // m * m


def _vmem_estimate(S, I, Mp, Hp, batch_tile, seq_tile):
    """Rough bytes of double-buffered blocks + resident weights."""
    return (2 * S * seq_tile * Mp * 2            # G2 tiles (bf16)
            + 2 * batch_tile * S * 4             # u tiles (f32)
            + 2 * batch_tile * seq_tile * I * 4  # x tiles (f32)
            + 2 * batch_tile * seq_tile * Hp * 4 # out tiles (f32)
            + Mp * Hp * 2 + I * Hp * 2 + Hp * 4) # weights / bias


def _pick_seq_tile(S, I, Mp, Hp, batch_tile, budget_bytes=40 * 1024 * 1024):
    """Largest seq tile (multiple of 8 dividing S) whose blocks fit the budget."""
    if S % 8 != 0:
        return S                        # block must equal the full dim
    cands = [d for d in range(8, S + 1, 8) if S % d == 0]
    best = cands[0]
    for st in cands:
        if _vmem_estimate(S, I, Mp, Hp, batch_tile, st) <= budget_bytes:
            best = max(best, st)
    return best


# ----------------------------------------------------------------------------
# Pallas kernel: grid = (seq tiles, batch tiles); G2 tile reused over batch.
# ----------------------------------------------------------------------------
def lmu_fft_kernel(u_ref, x_ref, g2_ref, whm_ref, whx_ref, bh_ref, h_ref):
    bt, tt, _ = h_ref.shape             # [batch_tile, seq_tile, Hp]
    mp = whm_ref.shape[0]               # padded memory size

    # Hoisted operands (loaded once per grid cell).
    u_bf = u_ref[...].astype(jnp.bfloat16)            # [bt, S]
    x_bf = x_ref[...].astype(jnp.bfloat16)            # [bt, tt, I]
    whm = whm_ref[...]                                 # [Mp, Hp] bf16
    whx = whx_ref[...]                                 # [I,  Hp] bf16
    bh = bh_ref[...]                                   # [1,  Hp] f32

    # Per local timestep: one causal-conv matmul + the small W_h matmuls.
    # Keeps live intermediates at [bt, Mp] / [bt, Hp] (no vreg spills).
    for i in range(tt):
        g2_i = g2_ref[:, i * mp:(i + 1) * mp]          # [S, Mp] bf16 (static lane slice)
        m_i = jnp.dot(u_bf, g2_i, preferred_element_type=jnp.float32)      # [bt, Mp]
        h_i = (jnp.dot(m_i.astype(jnp.bfloat16), whm,
                       preferred_element_type=jnp.float32)
               + jnp.dot(x_bf[:, i, :], whx, preferred_element_type=jnp.float32)
               + bh)
        h_ref[:, i, :] = jnp.maximum(h_i, 0.0).astype(h_ref.dtype)


def lmu_fft_forward(x, wu, bu, wh, bh, Hmat, *, batch_tile=128, seq_tile=None):
    """x: [batch, seq, input]. Returns (h [batch, seq, hidden], h_n [batch, hidden])."""
    x = jnp.asarray(x, jnp.float32)
    B, S, I = x.shape
    Hmat = np.asarray(Hmat, np.float32)
    M = Hmat.shape[0]
    wh = np.asarray(wh, np.float32)
    Hd = wh.shape[0]

    Mp = _round_up(M, 128)                       # lane-dense memory dim
    Hp = _round_up(Hd, 128)                      # lane-dense hidden dim

    # Batch tile: multiple of 8, capped by (rounded-up) batch; pad batch to fit.
    batch_tile = _round_up(max(8, min(batch_tile, _round_up(B, 8))), 8)
    Bp = _round_up(B, batch_tile)
    if Bp != B:
        x = jnp.concatenate([x, jnp.zeros((Bp - B, S, I), jnp.float32)], axis=0)

    # Sequence tile: VMEM-budget driven (also fits v7x's 64 MiB VMEM).
    if seq_tile is None:
        seq_tile = _pick_seq_tile(S, I, Mp, Hp, batch_tile)
    assert S % seq_tile == 0 and (seq_tile % 8 == 0 or seq_tile == S)

    # ---- u = relu(x @ W_u^T + b_u), hoisted to plain XLA (computed once) ----
    wu_vec = jnp.asarray(np.asarray(wu, np.float32).reshape(I))
    bu_sc = float(np.asarray(bu, np.float32).reshape(()))
    u = jnp.maximum(jnp.einsum("bsi,i->bs", x, wu_vec) + bu_sc, 0.0)   # [Bp, S] f32

    # ---- host-side parameter prep (vectorized, padded, bf16 matmul operands)
    HT = Hmat.T                                              # [S, M]
    lag = np.arange(S)[:, None] - np.arange(S)[None, :]      # lag[t, s] = t - s
    G = np.where((lag >= 0)[:, :, None], HT[np.clip(lag, 0, S - 1)], 0.0)
    Gp = np.zeros((S, S, Mp), np.float32)
    Gp[:, :, :M] = G                                         # [t, s, Mp]
    G2 = np.ascontiguousarray(Gp.transpose(1, 0, 2)).reshape(S, S * Mp)

    whm = np.zeros((Mp, Hp), np.float32); whm[:M, :Hd] = wh[:, :M].T
    whx = np.zeros((I, Hp), np.float32);  whx[:, :Hd] = wh[:, M:].T
    bh2 = np.zeros((1, Hp), np.float32);  bh2[0, :Hd] = np.asarray(bh, np.float32).reshape(-1)

    g2_j = jnp.asarray(G2, jnp.bfloat16)
    whm_j = jnp.asarray(whm, jnp.bfloat16)
    whx_j = jnp.asarray(whx, jnp.bfloat16)
    bh_j = jnp.asarray(bh2, jnp.float32)

    nt = S // seq_tile
    nb = Bp // batch_tile

    est = _vmem_estimate(S, I, Mp, Hp, batch_tile, seq_tile)
    vmem_limit = int(max(32 * 1024 * 1024,
                         min(48 * 1024 * 1024, est * 5 // 4 + (4 << 20))))

    # Grid: seq-tile axis OUTER so the (large) G2 tile is DMA'd once per seq
    # tile and reused across all batch tiles on the inner axis.
    h = pl.pallas_call(
        lmu_fft_kernel,
        grid=(nt, nb),
        in_specs=[
            pl.BlockSpec((batch_tile, S), lambda t, b: (b, 0)),               # u
            pl.BlockSpec((batch_tile, seq_tile, I), lambda t, b: (b, t, 0)),  # x
            pl.BlockSpec((S, seq_tile * Mp), lambda t, b: (0, t)),            # G2 tile
            pl.BlockSpec((Mp, Hp), lambda t, b: (0, 0)),                      # W_h (mem)
            pl.BlockSpec((I, Hp), lambda t, b: (0, 0)),                       # W_h (inp)
            pl.BlockSpec((1, Hp), lambda t, b: (0, 0)),                       # b_h
        ],
        out_specs=pl.BlockSpec((batch_tile, seq_tile, Hp), lambda t, b: (b, t, 0)),
        out_shape=jax.ShapeDtypeStruct((Bp, S, Hp), jnp.float32),
        compiler_params=pltpu.CompilerParams(
            dimension_semantics=("parallel", "arbitrary"),
            vmem_limit_bytes=vmem_limit),
    )(u, x, g2_j, whm_j, whx_j, bh_j)

    h = h[:B, :, :Hd]
    h_n = h[:, -1, :]
    return h, h_n


# ----------------------------------------------------------------------------
# Pure numpy (float64) reference: identical math to the torch FFT-based forward
# (zero-padded rfft/irfft of length-S signals == causal linear convolution).
# ----------------------------------------------------------------------------
def reference_forward(x, wu, bu, wh, bh, Hmat):
    x = np.asarray(x, np.float64)
    wu = np.asarray(wu, np.float64)
    bu = np.asarray(bu, np.float64)
    wh = np.asarray(wh, np.float64)
    bh = np.asarray(bh, np.float64)
    Hmat = np.asarray(Hmat, np.float64)
    u = np.maximum(x @ wu.T + bu, 0.0)[:, :, 0]           # [B, S]
    Bsz, S = u.shape
    M = Hmat.shape[0]
    m = np.zeros((Bsz, S, M), dtype=np.float64)
    for t in range(S):
        for s in range(t + 1):
            m[:, t, :] += u[:, s:s + 1] * Hmat[None, :, t - s]
    input_h = np.concatenate([m, x], axis=-1)
    h = np.maximum(input_h @ wh.T + bh, 0.0)
    return h, h[:, -1, :]


if __name__ == "__main__":
    # Module hyper-parameters (small, forward-consistent shapes).
    input_size, hidden_size, memory_size, seq_len, theta = 4, 32, 16, 16, 16.0
    batch = 32

    A, B = state_space_matrices(memory_size, theta)
    Hmat = impulse(A, B, seq_len)                          # [memory_size, seq_len], f64

    key = jax.random.PRNGKey(0)
    kwu, kbu, kwh, kbh, kx = jax.random.split(key, 5)
    wu = jax.random.normal(kwu, (1, input_size), jnp.float32) * 0.5        # W_u.weight
    bu = jax.random.normal(kbu, (1,), jnp.float32) * 0.1                   # W_u.bias
    wh = jax.random.normal(kwh, (hidden_size, memory_size + input_size),
                           jnp.float32) * 0.1                              # W_h.weight
    bh = jax.random.normal(kbh, (hidden_size,), jnp.float32) * 0.1         # W_h.bias
    x = jax.random.normal(kx, (batch, seq_len, input_size), jnp.float32)

    # Force a 2x2 grid (2 seq tiles outer, 2 batch tiles inner) so the G2-reuse
    # reorder and multi-tile indexing are exercised even at these small shapes.
    h, h_n = lmu_fft_forward(x, np.asarray(wu), np.asarray(bu),
                             np.asarray(wh), np.asarray(bh), Hmat,
                             batch_tile=16, seq_tile=8)
    h = jax.block_until_ready(h)
    h_n = jax.block_until_ready(h_n)

    h_ref, h_n_ref = reference_forward(np.asarray(x), np.asarray(wu), np.asarray(bu),
                                       np.asarray(wh), np.asarray(bh), Hmat)
    # Tolerance reflects bf16 MXU operands with f32 accumulation.
    np.testing.assert_allclose(np.asarray(h), h_ref, rtol=3e-2, atol=3e-2)
    np.testing.assert_allclose(np.asarray(h_n), h_n_ref, rtol=3e-2, atol=3e-2)
    print("KERNEL_OK")
</pallas_src>

<mosaic_0001>
module attributes {stable_mosaic.version = 11 : i64} {
  func.func @lmu_fft_kernel(%arg0: i32, %arg1: i32, %arg2: memref<16x16xf32, #tpu.memory_space<vmem>>, %arg3: memref<16x8x4xf32, #tpu.memory_space<vmem>>, %arg4: memref<16x1024xbf16, #tpu.memory_space<vmem>>, %arg5: memref<128x128xbf16, #tpu.memory_space<vmem>>, %arg6: memref<4x128xbf16, #tpu.memory_space<vmem>>, %arg7: memref<1x128xf32, #tpu.memory_space<vmem>>, %arg8: memref<16x8x128xf32, #tpu.memory_space<vmem>>) attributes {dimension_semantics = [#tpu.dimension_semantics<parallel>, #tpu.dimension_semantics<arbitrary>], iteration_bounds = array<i64: 2, 2>, scalar_prefetch = 0 : i64, scratch_operands = 0 : i64, tpu.core_type = #tpu.core_type<tc>, window_params = [{transform_indices = @transform_0, window_bounds = array<i64: 16, 16>}, {transform_indices = @transform_1, window_bounds = array<i64: 16, 8, 4>}, {transform_indices = @transform_2, window_bounds = array<i64: 16, 1024>}, {pipeline_mode = #tpu.pipeline_mode<synchronous>, transform_indices = @transform_3, window_bounds = array<i64: 128, 128>}, {pipeline_mode = #tpu.pipeline_mode<synchronous>, transform_indices = @transform_4, window_bounds = array<i64: 4, 128>}, {pipeline_mode = #tpu.pipeline_mode<synchronous>, transform_indices = @transform_5, window_bounds = array<i64: 1, 128>}, {transform_indices = @transform_6, window_bounds = array<i64: 16, 8, 128>}]} {
    %c0 = arith.constant 0 : index
    %c0_0 = arith.constant 0 : index
    %0 = vector.load %arg2[%c0, %c0_0] : memref<16x16xf32, #tpu.memory_space<vmem>>, vector<16x16xf32>
    %1 = arith.truncf %0 : vector<16x16xf32> to vector<16x16xbf16>
    %c0_1 = arith.constant 0 : index
    %c0_2 = arith.constant 0 : index
    %c0_3 = arith.constant 0 : index
    %2 = vector.load %arg3[%c0_1, %c0_2, %c0_3] : memref<16x8x4xf32, #tpu.memory_space<vmem>>, vector<16x8x4xf32>
    %3 = arith.truncf %2 : vector<16x8x4xf32> to vector<16x8x4xbf16>
    %c0_4 = arith.constant 0 : index
    %c0_5 = arith.constant 0 : index
    %4 = vector.load %arg5[%c0_4, %c0_5] : memref<128x128xbf16, #tpu.memory_space<vmem>>, vector<128x128xbf16>
    %c0_6 = arith.constant 0 : index
    %c0_7 = arith.constant 0 : index
    %5 = vector.load %arg6[%c0_6, %c0_7] : memref<4x128xbf16, #tpu.memory_space<vmem>>, vector<4x128xbf16>
    %c0_8 = arith.constant 0 : index
    %c0_9 = arith.constant 0 : index
    %6 = vector.load %arg7[%c0_8, %c0_9] : memref<1x128xf32, #tpu.memory_space<vmem>>, vector<1x128xf32>
    %c0_10 = arith.constant 0 : index
    %c0_11 = arith.constant 0 : index
    %7 = vector.load %arg4[%c0_10, %c0_11] : memref<16x1024xbf16, #tpu.memory_space<vmem>>, vector<16x128xbf16>
    %cst = arith.constant dense<0.000000e+00> : vector<16x128xf32>
    %8 = tpu.matmul %1, %7, %cst {dimension_numbers = #tpu.dot_dimension_numbers<[1], [0], [0], [1], [0, 0, 1, 1], [], []>} : vector<16x16xbf16>, vector<16x128xbf16>, vector<16x128xf32> -> vector<16x128xf32>
    %9 = arith.truncf %8 : vector<16x128xf32> to vector<16x128xbf16>
    %cst_12 = arith.constant dense<0.000000e+00> : vector<16x128xf32>
    %10 = tpu.matmul %9, %4, %cst_12 {dimension_numbers = #tpu.dot_dimension_numbers<[1], [0], [0], [1], [0, 0, 1, 1], [], []>} : vector<16x128xbf16>, vector<128x128xbf16>, vector<16x128xf32> -> vector<16x128xf32>
    %11 = vector.extract_strided_slice %3 {offsets = [0, 0, 0], sizes = [16, 1, 4], strides = [1, 1, 1]} : vector<16x8x4xbf16> to vector<16x1x4xbf16>
    %12 = vector.shape_cast %11 : vector<16x1x4xbf16> to vector<16x4xbf16>
    %cst_13 = arith.constant dense<0.000000e+00> : vector<16x128xf32>
    %13 = tpu.matmul %12, %5, %cst_13 {dimension_numbers = #tpu.dot_dimension_numbers<[1], [0], [0], [1], [0, 0, 1, 1], [], []>} : vector<16x4xbf16>, vector<4x128xbf16>, vector<16x128xf32> -> vector<16x128xf32>
    %14 = arith.addf %10, %13 : vector<16x128xf32>
    %15 = vector.broadcast %6 : vector<1x128xf32> to vector<16x128xf32>
    %16 = arith.addf %14, %15 : vector<16x128xf32>
    %cst_14 = arith.constant 0.000000e+00 : f32
    %17 = vector.broadcast %cst_14 : f32 to vector<16x128xf32>
    %18 = arith.maximumf %16, %17 : vector<16x128xf32>
    %c0_15 = arith.constant 0 : index
    %c0_16 = arith.constant 0 : index
    %c0_17 = arith.constant 0 : index
    %19 = vector.load %arg8[%c0_15, %c0_16, %c0_17] : memref<16x8x128xf32, #tpu.memory_space<vmem>>, vector<16x1x128xf32>
    %20 = vector.shape_cast %19 : vector<16x1x128xf32> to vector<16x128xf32>
    %21 = vector.shape_cast %18 : vector<16x128xf32> to vector<16x1x128xf32>
    tpu.vector_store %arg8[%c0_15, %c0_16, %c0_17], %21 {strides = array<i32>} : memref<16x8x128xf32, #tpu.memory_space<vmem>>, vector<16x1x128xf32>,
    %c0_18 = arith.constant 0 : index
    %c128 = arith.constant 128 : index
    %22 = vector.load %arg4[%c0_18, %c128] : memref<16x1024xbf16, #tpu.memory_space<vmem>>, vector<16x128xbf16>
    %cst_19 = arith.constant dense<0.000000e+00> : vector<16x128xf32>
    %23 = tpu.matmul %1, %22, %cst_19 {dimension_numbers = #tpu.dot_dimension_numbers<[1], [0], [0], [1], [0, 0, 1, 1], [], []>} : vector<16x16xbf16>, vector<16x128xbf16>, vector<16x128xf32> -> vector<16x128xf32>
    %24 = arith.truncf %23 : vector<16x128xf32> to vector<16x128xbf16>
    %cst_20 = arith.constant dense<0.000000e+00> : vector<16x128xf32>
    %25 = tpu.matmul %24, %4, %cst_20 {dimension_numbers = #tpu.dot_dimension_numbers<[1], [0], [0], [1], [0, 0, 1, 1], [], []>} : vector<16x128xbf16>, vector<128x128xbf16>, vector<16x128xf32> -> vector<16x128xf32>
    %26 = vector.extract_strided_slice %3 {offsets = [0, 1, 0], sizes = [16, 1, 4], strides = [1, 1, 1]} : vector<16x8x4xbf16> to vector<16x1x4xbf16>
    %27 = vector.shape_cast %26 : vector<16x1x4xbf16> to vector<16x4xbf16>
    %cst_21 = arith.constant dense<0.000000e+00> : vector<16x128xf32>
    %28 = tpu.matmul %27, %5, %cst_21 {dimension_numbers = #tpu.dot_dimension_numbers<[1], [0], [0], [1], [0, 0, 1, 1], [], []>} : vector<16x4xbf16>, vector<4x128xbf16>, vector<16x128xf32> -> vector<16x128xf32>
    %29 = arith.addf %25, %28 : vector<16x128xf32>
    %30 = vector.broadcast %6 : vector<1x128xf32> to vector<16x128xf32>
    %31 = arith.addf %29, %30 : vector<16x128xf32>
    %cst_22 = arith.constant 0.000000e+00 : f32
    %32 = vector.broadcast %cst_22 : f32 to vector<16x128xf32>
    %33 = arith.maximumf %31, %32 : vector<16x128xf32>
    %c0_23 = arith.constant 0 : index
    %c1 = arith.constant 1 : index
    %c0_24 = arith.constant 0 : index
    %34 = vector.load %arg8[%c0_23, %c1, %c0_24] : memref<16x8x128xf32, #tpu.memory_space<vmem>>, vector<16x1x128xf32>
    %35 = vector.shape_cast %34 : vector<16x1x128xf32> to vector<16x128xf32>
    %36 = vector.shape_cast %33 : vector<16x128xf32> to vector<16x1x128xf32>
    tpu.vector_store %arg8[%c0_23, %c1, %c0_24], %36 {strides = array<i32>} : memref<16x8x128xf32, #tpu.memory_space<vmem>>, vector<16x1x128xf32>,
    %c0_25 = arith.constant 0 : index
    %c256 = arith.constant 256 : index
    %37 = vector.load %arg4[%c0_25, %c256] : memref<16x1024xbf16, #tpu.memory_space<vmem>>, vector<16x128xbf16>
    %cst_26 = arith.constant dense<0.000000e+00> : vector<16x128xf32>
    %38 = tpu.matmul %1, %37, %cst_26 {dimension_numbers = #tpu.dot_dimension_numbers<[1], [0], [0], [1], [0, 0, 1, 1], [], []>} : vector<16x16xbf16>, vector<16x128xbf16>, vector<16x128xf32> -> vector<16x128xf32>
    %39 = arith.truncf %38 : vector<16x128xf32> to vector<16x128xbf16>
    %cst_27 = arith.constant dense<0.000000e+00> : vector<16x128xf32>
    %40 = tpu.matmul %39, %4, %cst_27 {dimension_numbers = #tpu.dot_dimension_numbers<[1], [0], [0], [1], [0, 0, 1, 1], [], []>} : vector<16x128xbf16>, vector<128x128xbf16>, vector<16x128xf32> -> vector<16x128xf32>
    %41 = vector.extract_strided_slice %3 {offsets = [0, 2, 0], sizes = [16, 1, 4], strides = [1, 1, 1]} : vector<16x8x4xbf16> to vector<16x1x4xbf16>
    %42 = vector.shape_cast %41 : vector<16x1x4xbf16> to vector<16x4xbf16>
    %cst_28 = arith.constant dense<0.000000e+00> : vector<16x128xf32>
    %43 = tpu.matmul %42, %5, %cst_28 {dimension_numbers = #tpu.dot_dimension_numbers<[1], [0], [0], [1], [0, 0, 1, 1], [], []>} : vector<16x4xbf16>, vector<4x128xbf16>, vector<16x128xf32> -> vector<16x128xf32>
    %44 = arith.addf %40, %43 : vector<16x128xf32>
    %45 = vector.broadcast %6 : vector<1x128xf32> to vector<16x128xf32>
    %46 = arith.addf %44, %45 : vector<16x128xf32>
    %cst_29 = arith.constant 0.000000e+00 : f32
    %47 = vector.broadcast %cst_29 : f32 to vector<16x128xf32>
    %48 = arith.maximumf %46, %47 : vector<16x128xf32>
    %c0_30 = arith.constant 0 : index
    %c2 = arith.constant 2 : index
    %c0_31 = arith.constant 0 : index
    %49 = vector.load %arg8[%c0_30, %c2, %c0_31] : memref<16x8x128xf32, #tpu.memory_space<vmem>>, vector<16x1x128xf32>
    %50 = vector.shape_cast %49 : vector<16x1x128xf32> to vector<16x128xf32>
    %51 = vector.shape_cast %48 : vector<16x128xf32> to vector<16x1x128xf32>
    tpu.vector_store %arg8[%c0_30, %c2, %c0_31], %51 {strides = array<i32>} : memref<16x8x128xf32, #tpu.memory_space<vmem>>, vector<16x1x128xf32>,
    %c0_32 = arith.constant 0 : index
    %c384 = arith.constant 384 : index
    %52 = vector.load %arg4[%c0_32, %c384] : memref<16x1024xbf16, #tpu.memory_space<vmem>>, vector<16x128xbf16>
    %cst_33 = arith.constant dense<0.000000e+00> : vector<16x128xf32>
    %53 = tpu.matmul %1, %52, %cst_33 {dimension_numbers = #tpu.dot_dimension_numbers<[1], [0], [0], [1], [0, 0, 1, 1], [], []>} : vector<16x16xbf16>, vector<16x128xbf16>, vector<16x128xf32> -> vector<16x128xf32>
    %54 = arith.truncf %53 : vector<16x128xf32> to vector<16x128xbf16>
    %cst_34 = arith.constant dense<0.000000e+00> : vector<16x128xf32>
    %55 = tpu.matmul %54, %4, %cst_34 {dimension_numbers = #tpu.dot_dimension_numbers<[1], [0], [0], [1], [0, 0, 1, 1], [], []>} : vector<16x128xbf16>, vector<128x128xbf16>, vector<16x128xf32> -> vector<16x128xf32>
    %56 = vector.extract_strided_slice %3 {offsets = [0, 3, 0], sizes = [16, 1, 4], strides = [1, 1, 1]} : vector<16x8x4xbf16> to vector<16x1x4xbf16>
    %57 = vector.shape_cast %56 : vector<16x1x4xbf16> to vector<16x4xbf16>
    %cst_35 = arith.constant dense<0.000000e+00> : vector<16x128xf32>
    %58 = tpu.matmul %57, %5, %cst_35 {dimension_numbers = #tpu.dot_dimension_numbers<[1], [0], [0], [1], [0, 0, 1, 1], [], []>} : vector<16x4xbf16>, vector<4x128xbf16>, vector<16x128xf32> -> vector<16x128xf32>
    %59 = arith.addf %55, %58 : vector<16x128xf32>
    %60 = vector.broadcast %6 : vector<1x128xf32> to vector<16x128xf32>
    %61 = arith.addf %59, %60 : vector<16x128xf32>
    %cst_36 = arith.constant 0.000000e+00 : f32
    %62 = vector.broadcast %cst_36 : f32 to vector<16x128xf32>
    %63 = arith.maximumf %61, %62 : vector<16x128xf32>
    %c0_37 = arith.constant 0 : index
    %c3 = arith.constant 3 : index
    %c0_38 = arith.constant 0 : index
    %64 = vector.load %arg8[%c0_37, %c3, %c0_38] : memref<16x8x128xf32, #tpu.memory_space<vmem>>, vector<16x1x128xf32>
    %65 = vector.shape_cast %64 : vector<16x1x128xf32> to vector<16x128xf32>
    %66 = vector.shape_cast %63 : vector<16x128xf32> to vector<16x1x128xf32>
    tpu.vector_store %arg8[%c0_37, %c3, %c0_38], %66 {strides = array<i32>} : memref<16x8x128xf32, #tpu.memory_space<vmem>>, vector<16x1x128xf32>,
    %c0_39 = arith.constant 0 : index
    %c512 = arith.constant 512 : index
    %67 = vector.load %arg4[%c0_39, %c512] : memref<16x1024xbf16, #tpu.memory_space<vmem>>, vector<16x128xbf16>
    %cst_40 = arith.constant dense<0.000000e+00> : vector<16x128xf32>
    %68 = tpu.matmul %1, %67, %cst_40 {dimension_numbers = #tpu.dot_dimension_numbers<[1], [0], [0], [1], [0, 0, 1, 1], [], []>} : vector<16x16xbf16>, vector<16x128xbf16>, vector<16x128xf32> -> vector<16x128xf32>
    %69 = arith.truncf %68 : vector<16x128xf32> to vector<16x128xbf16>
    %cst_41 = arith.constant dense<0.000000e+00> : vector<16x128xf32>
    %70 = tpu.matmul %69, %4, %cst_41 {dimension_numbers = #tpu.dot_dimension_numbers<[1], [0], [0], [1], [0, 0, 1, 1], [], []>} : vector<16x128xbf16>, vector<128x128xbf16>, vector<16x128xf32> -> vector<16x128xf32>
    %71 = vector.extract_strided_slice %3 {offsets = [0, 4, 0], sizes = [16, 1, 4], strides = [1, 1, 1]} : vector<16x8x4xbf16> to vector<16x1x4xbf16>
    %72 = vector.shape_cast %71 : vector<16x1x4xbf16> to vector<16x4xbf16>
    %cst_42 = arith.constant dense<0.000000e+00> : vector<16x128xf32>
    %73 = tpu.matmul %72, %5, %cst_42 {dimension_numbers = #tpu.dot_dimension_numbers<[1], [0], [0], [1], [0, 0, 1, 1], [], []>} : vector<16x4xbf16>, vector<4x128xbf16>, vector<16x128xf32> -> vector<16x128xf32>
    %74 = arith.addf %70, %73 : vector<16x128xf32>
    %75 = vector.broadcast %6 : vector<1x128xf32> to vector<16x128xf32>
    %76 = arith.addf %74, %75 : vector<16x128xf32>
    %cst_43 = arith.constant 0.000000e+00 : f32
    %77 = vector.broadcast %cst_43 : f32 to vector<16x128xf32>
    %78 = arith.maximumf %76, %77 : vector<16x128xf32>
    %c0_44 = arith.constant 0 : index
    %c4 = arith.constant 4 : index
    %c0_45 = arith.constant 0 : index
    %79 = vector.load %arg8[%c0_44, %c4, %c0_45] : memref<16x8x128xf32, #tpu.memory_space<vmem>>, vector<16x1x128xf32>
    %80 = vector.shape_cast %79 : vector<16x1x128xf32> to vector<16x128xf32>
    %81 = vector.shape_cast %78 : vector<16x128xf32> to vector<16x1x128xf32>
    tpu.vector_store %arg8[%c0_44, %c4, %c0_45], %81 {strides = array<i32>} : memref<16x8x128xf32, #tpu.memory_space<vmem>>, vector<16x1x128xf32>,
    %c0_46 = arith.constant 0 : index
    %c640 = arith.constant 640 : index
    %82 = vector.load %arg4[%c0_46, %c640] : memref<16x1024xbf16, #tpu.memory_space<vmem>>, vector<16x128xbf16>
    %cst_47 = arith.constant dense<0.000000e+00> : vector<16x128xf32>
    %83 = tpu.matmul %1, %82, %cst_47 {dimension_numbers = #tpu.dot_dimension_numbers<[1], [0], [0], [1], [0, 0, 1, 1], [], []>} : vector<16x16xbf16>, vector<16x128xbf16>, vector<16x128xf32> -> vector<16x128xf32>
    %84 = arith.truncf %83 : vector<16x128xf32> to vector<16x128xbf16>
    %cst_48 = arith.constant dense<0.000000e+00> : vector<16x128xf32>
    %85 = tpu.matmul %84, %4, %cst_48 {dimension_numbers = #tpu.dot_dimension_numbers<[1], [0], [0], [1], [0, 0, 1, 1], [], []>} : vector<16x128xbf16>, vector<128x128xbf16>, vector<16x128xf32> -> vector<16x128xf32>
    %86 = vector.extract_strided_slice %3 {offsets = [0, 5, 0], sizes = [16, 1, 4], strides = [1, 1, 1]} : vector<16x8x4xbf16> to vector<16x1x4xbf16>
    %87 = vector.shape_cast %86 : vector<16x1x4xbf16> to vector<16x4xbf16>
    %cst_49 = arith.constant dense<0.000000e+00> : vector<16x128xf32>
    %88 = tpu.matmul %87, %5, %cst_49 {dimension_numbers = #tpu.dot_dimension_numbers<[1], [0], [0], [1], [0, 0, 1, 1], [], []>} : vector<16x4xbf16>, vector<4x128xbf16>, vector<16x128xf32> -> vector<16x128xf32>
    %89 = arith.addf %85, %88 : vector<16x128xf32>
    %90 = vector.broadcast %6 : vector<1x128xf32> to vector<16x128xf32>
    %91 = arith.addf %89, %90 : vector<16x128xf32>
    %cst_50 = arith.constant 0.000000e+00 : f32
    %92 = vector.broadcast %cst_50 : f32 to vector<16x128xf32>
    %93 = arith.maximumf %91, %92 : vector<16x128xf32>
    %c0_51 = arith.constant 0 : index
    %c5 = arith.constant 5 : index
    %c0_52 = arith.constant 0 : index
    %94 = vector.load %arg8[%c0_51, %c5, %c0_52] : memref<16x8x128xf32, #tpu.memory_space<vmem>>, vector<16x1x128xf32>
    %95 = vector.shape_cast %94 : vector<16x1x128xf32> to vector<16x128xf32>
    %96 = vector.shape_cast %93 : vector<16x128xf32> to vector<16x1x128xf32>
    tpu.vector_store %arg8[%c0_51, %c5, %c0_52], %96 {strides = array<i32>} : memref<16x8x128xf32, #tpu.memory_space<vmem>>, vector<16x1x128xf32>,
    %c0_53 = arith.constant 0 : index
    %c768 = arith.constant 768 : index
    %97 = vector.load %arg4[%c0_53, %c768] : memref<16x1024xbf16, #tpu.memory_space<vmem>>, vector<16x128xbf16>
    %cst_54 = arith.constant dense<0.000000e+00> : vector<16x128xf32>
    %98 = tpu.matmul %1, %97, %cst_54 {dimension_numbers = #tpu.dot_dimension_numbers<[1], [0], [0], [1], [0, 0, 1, 1], [], []>} : vector<16x16xbf16>, vector<16x128xbf16>, vector<16x128xf32> -> vector<16x128xf32>
    %99 = arith.truncf %98 : vector<16x128xf32> to vector<16x128xbf16>
    %cst_55 = arith.constant dense<0.000000e+00> : vector<16x128xf32>
    %100 = tpu.matmul %99, %4, %cst_55 {dimension_numbers = #tpu.dot_dimension_numbers<[1], [0], [0], [1], [0, 0, 1, 1], [], []>} : vector<16x128xbf16>, vector<128x128xbf16>, vector<16x128xf32> -> vector<16x128xf32>
    %101 = vector.extract_strided_slice %3 {offsets = [0, 6, 0], sizes = [16, 1, 4], strides = [1, 1, 1]} : vector<16x8x4xbf16> to vector<16x1x4xbf16>
    %102 = vector.shape_cast %101 : vector<16x1x4xbf16> to vector<16x4xbf16>
    %cst_56 = arith.constant dense<0.000000e+00> : vector<16x128xf32>
    %103 = tpu.matmul %102, %5, %cst_56 {dimension_numbers = #tpu.dot_dimension_numbers<[1], [0], [0], [1], [0, 0, 1, 1], [], []>} : vector<16x4xbf16>, vector<4x128xbf16>, vector<16x128xf32> -> vector<16x128xf32>
    %104 = arith.addf %100, %103 : vector<16x128xf32>
    %105 = vector.broadcast %6 : vector<1x128xf32> to vector<16x128xf32>
    %106 = arith.addf %104, %105 : vector<16x128xf32>
    %cst_57 = arith.constant 0.000000e+00 : f32
    %107 = vector.broadcast %cst_57 : f32 to vector<16x128xf32>
    %108 = arith.maximumf %106, %107 : vector<16x128xf32>
    %c0_58 = arith.constant 0 : index
    %c6 = arith.constant 6 : index
    %c0_59 = arith.constant 0 : index
    %109 = vector.load %arg8[%c0_58, %c6, %c0_59] : memref<16x8x128xf32, #tpu.memory_space<vmem>>, vector<16x1x128xf32>
    %110 = vector.shape_cast %109 : vector<16x1x128xf32> to vector<16x128xf32>
    %111 = vector.shape_cast %108 : vector<16x128xf32> to vector<16x1x128xf32>
    tpu.vector_store %arg8[%c0_58, %c6, %c0_59], %111 {strides = array<i32>} : memref<16x8x128xf32, #tpu.memory_space<vmem>>, vector<16x1x128xf32>,
    %c0_60 = arith.constant 0 : index
    %c896 = arith.constant 896 : index
    %112 = vector.load %arg4[%c0_60, %c896] : memref<16x1024xbf16, #tpu.memory_space<vmem>>, vector<16x128xbf16>
    %cst_61 = arith.constant dense<0.000000e+00> : vector<16x128xf32>
    %113 = tpu.matmul %1, %112, %cst_61 {dimension_numbers = #tpu.dot_dimension_numbers<[1], [0], [0], [1], [0, 0, 1, 1], [], []>} : vector<16x16xbf16>, vector<16x128xbf16>, vector<16x128xf32> -> vector<16x128xf32>
    %114 = arith.truncf %113 : vector<16x128xf32> to vector<16x128xbf16>
    %cst_62 = arith.constant dense<0.000000e+00> : vector<16x128xf32>
    %115 = tpu.matmul %114, %4, %cst_62 {dimension_numbers = #tpu.dot_dimension_numbers<[1], [0], [0], [1], [0, 0, 1, 1], [], []>} : vector<16x128xbf16>, vector<128x128xbf16>, vector<16x128xf32> -> vector<16x128xf32>
    %116 = vector.extract_strided_slice %3 {offsets = [0, 7, 0], sizes = [16, 1, 4], strides = [1, 1, 1]} : vector<16x8x4xbf16> to vector<16x1x4xbf16>
    %117 = vector.shape_cast %116 : vector<16x1x4xbf16> to vector<16x4xbf16>
    %cst_63 = arith.constant dense<0.000000e+00> : vector<16x128xf32>
    %118 = tpu.matmul %117, %5, %cst_63 {dimension_numbers = #tpu.dot_dimension_numbers<[1], [0], [0], [1], [0, 0, 1, 1], [], []>} : vector<16x4xbf16>, vector<4x128xbf16>, vector<16x128xf32> -> vector<16x128xf32>
    %119 = arith.addf %115, %118 : vector<16x128xf32>
    %120 = vector.broadcast %6 : vector<1x128xf32> to vector<16x128xf32>
    %121 = arith.addf %119, %120 : vector<16x128xf32>
    %cst_64 = arith.constant 0.000000e+00 : f32
    %122 = vector.broadcast %cst_64 : f32 to vector<16x128xf32>
    %123 = arith.maximumf %121, %122 : vector<16x128xf32>
    %c0_65 = arith.constant 0 : index
    %c7 = arith.constant 7 : index
    %c0_66 = arith.constant 0 : index
    %124 = vector.load %arg8[%c0_65, %c7, %c0_66] : memref<16x8x128xf32, #tpu.memory_space<vmem>>, vector<16x1x128xf32>
    %125 = vector.shape_cast %124 : vector<16x1x128xf32> to vector<16x128xf32>
    %126 = vector.shape_cast %123 : vector<16x128xf32> to vector<16x1x128xf32>
    tpu.vector_store %arg8[%c0_65, %c7, %c0_66], %126 {strides = array<i32>} : memref<16x8x128xf32, #tpu.memory_space<vmem>>, vector<16x1x128xf32>,
    return
  }
  func.func @transform_0(%arg0: i32, %arg1: i32) -> (i32, i32) {
    %c0_i32 = arith.constant 0 : i32
    %c0_i32_0 = arith.constant 0 : i32
    return %arg1, %c0_i32 : i32, i32
  }
  func.func @transform_1(%arg0: i32, %arg1: i32) -> (i32, i32, i32) {
    %c0_i32 = arith.constant 0 : i32
    %c0_i32_0 = arith.constant 0 : i32
    return %arg1, %arg0, %c0_i32 : i32, i32, i32
  }
  func.func @transform_2(%arg0: i32, %arg1: i32) -> (i32, i32) {
    %c0_i32 = arith.constant 0 : i32
    %c0_i32_0 = arith.constant 0 : i32
    return %c0_i32, %arg0 : i32, i32
  }
  func.func @transform_3(%arg0: i32, %arg1: i32) -> (i32, i32) {
    %c0_i32 = arith.constant 0 : i32
    %c0_i32_0 = arith.constant 0 : i32
    %c0_i32_1 = arith.constant 0 : i32
    return %c0_i32, %c0_i32_0 : i32, i32
  }
  func.func @transform_4(%arg0: i32, %arg1: i32) -> (i32, i32) {
    %c0_i32 = arith.constant 0 : i32
    %c0_i32_0 = arith.constant 0 : i32
    %c0_i32_1 = arith.constant 0 : i32
    return %c0_i32, %c0_i32_0 : i32, i32
  }
  func.func @transform_5(%arg0: i32, %arg1: i32) -> (i32, i32) {
    %c0_i32 = arith.constant 0 : i32
    %c0_i32_0 = arith.constant 0 : i32
    %c0_i32_1 = arith.constant 0 : i32
    return %c0_i32, %c0_i32_0 : i32, i32
  }
  func.func @transform_6(%arg0: i32, %arg1: i32) -> (i32, i32, i32) {
    %c0_i32 = arith.constant 0 : i32
    %c0_i32_0 = arith.constant 0 : i32
    return %arg1, %arg0, %c0_i32 : i32, i32, i32
  }
}

</mosaic_0001>

<bundles_post_ra>
// kernel: tpu_custom_call.1
= control target key start
LH: loop header
LB: loop body
LE: loop exit
PB: predicated region body
PF: predicated region fallthrough
CT: control target
= control target key end

     0   :  { %11 = vsyncpa [#allocation5], 0  ;;  %s5049_s0 = inlined_call_operand.vmem [shape: f32[32,16], index: 0, kind: input, shape index: {}]   ;;  %s5050_s1 = inlined_call_operand.vmem [shape: f32[32,16,4], index: 1, kind: input, shape index: {}]   ;;  %s5051_s2 = inlined_call_operand.vmem [shape: bf16[16,2048], index: 2, kind: input, shape index: {}]   ;;  %s5052_s3 = inlined_call_operand.vmem [shape: bf16[128,128], index: 3, kind: input, shape index: {}]   ;;  %s5053_s4 = inlined_call_operand.vmem [shape: bf16[4,128], index: 4, kind: input, shape index: {}]   ;;  %s5054_s5 = inlined_call_operand.vmem [shape: f32[1,128], index: 5, kind: input, shape index: {}]   ;;  %s5055_s6 = inlined_call_operand.hbm [shape: f32[32,16,128], index: 6, kind: output, shape index: {}]  }
   0x1   :  { %13 = vsyncpa [#allocation5 + $0x1], 0  ;;  %s3873_s21 = smov 0   ;;  %s3875_s22 = smov 0  }
   0x2   :  { %s3877_s23 = smov 0   ;;  %s3879_s24 = smov 0  }
   0x3   :  { %s3881_s25 = smov 0   ;;  %s3883_s26 = smov 0  }
   0x4   :  { %s3885_s27 = smov 0   ;;  %s3887_s28 = smov 0  }
   0x5   :  { %s3889_s29 = smov 0   ;;  %s3891_s30 = smov 0  }
   0x6 LB: > { %s3128_s7 = sadd.s32 4294967295, %s3829_s30   ;;  %s3129_s8 = sadd.s32 4294967294, %s3829_s30   ;;  %s3829_s30 = sphi %s3891_s30, %s19_s30   ;;  %s3825_s29 = sphi %s3889_s29, %s5075_s29   ;;  %s3821_s28 = sphi %s3887_s28, %s5074_s28   ;;  %s3817_s27 = sphi %s3885_s27, %s5073_s27   ;;  %s3813_s26 = sphi %s3883_s26, %s5072_s26   ;;  %s3809_s25 = sphi %s3881_s25, %s5071_s25   ;;  %s3805_s24 = sphi %s3879_s24, %s5070_s24   ;;  %s3801_s23 = sphi %s3877_s23, %s5069_s23   ;;  %s3797_s22 = sphi %s3875_s22, %s5068_s22   ;;  %s3793_s21 = sphi %s3873_s21, %s5067_s21  }
   0x7   : > { %s28_s9 = sadd.s32 1, %s3821_s28  ;;  %s31_s10 = sadd.s32 1, %s3825_s29 }
   0x8   : > { %p29_p0 = scmp.ge.s32.totalorder %s28_s9, 2  ;;  %s66_s11 = sadd.s32 1, %s3809_s25 }
   0x9   : > { %p73_p1 = scmp.ne.s32.totalorder %s3809_s25, %s3805_s24  ;;  %p74_p2 = scmp.eq.s32.totalorder %s3829_s30, 0 }
   0xa   : > { %s5077_s9 = smov (%p29_p0, %s28_s9), 0  ;;  %s5079_s10 = smov (!%p29_p0, %s31_s10), %s3825_s29 }
   0xb   : > { %5058 = sst [smem:[#allocation7_spill]] %s5077_s9  ;;  %s61_s12 = ssub.s32 %s3821_s28, %s5077_s9 }
   0xc   : > { %p3936_p3 = por %p74_p2, %p73_p1  ;;  %p33_p4 = scmp.ge.s32.totalorder %s5079_s10, 2 }
   0xd   : > { %s92_s14 = sadd.s32 1, %s3801_s23  ;;  %p99_p5 = scmp.ne.s32.totalorder %s3801_s23, %s3797_s22 }
   0xe   : > { %p194_p6 = scmp.eq.s32.totalorder %s3128_s7, 3  ;;  %s5081_s10 = smov (%p33_p4, %s5079_s10), 0 }
   0xf   : > { %5060 = sst [smem:[#allocation8_spill]] %s5081_s10  ;;  %p3945_p7 = por %p99_p5, %p74_p2 }
  0x10   : > { %p3949_p8 = por %p194_p6, %p73_p1  ;;  %s62_s17 = ssub.s32 %s3825_s29, %s5081_s10 }
  0x11   : > { %p199_p9 = scmp.ne.s32.totalorder %s3805_s24, %s3793_s21  ;;  %s63_s18 = sor.u32 %s62_s17, %s61_s12 }
  0x12   : > { %p90_p10 = scmp.eq.s32.totalorder %s62_s17, 0  ;;  %p64_p11 = scmp.eq.s32.totalorder %s63_s18, 0 }
  0x13   : > { %p200_p12 = scmp.eq.s32.totalorder %s3129_s8, 3  ;;  %p3131_p0 = scmp.ge.s32.totalorder %s3829_s30, 4 }
  0x14   : > { %s3958_s19 = scalar_select %p90_p10, %s3801_s23, %s92_s14  }
  0x15   : > { %s3961_s20 = scalar_select %p64_p11, %s3809_s25, %s66_s11  }
  0x16   : > { %p3963_p13 = por %p200_p12, %p199_p9  ;;  %225 = sbr.rel (%p3131_p0) target bundleno = 49 (0x31), region = 28 }
  0x1b   : > { %237 = sbr.rel (!%p3936_p3) target bundleno = 41 (0x29), region = 36  ;;  %s239_s12 = sand.u32 (%p3936_p3), 1, %s3809_s25  }
  0x1c   : > { %s3248_s17 = sshll.u32 (%p3936_p3), %s3821_s28, 5  ;;  %s3132_s8 = sshll.u32 (%p3936_p3), %s239_s12, 7 }
  0x1d   : > { %s244_s14 = sadd.s32 (%p3936_p3), %s3825_s29, %s3248_s17  ;;  %s241_s13 = scalar_lea.vmem (%p3936_p3), [#allocation2], %s3132_s8 }
  0x1e   : > { %s3135_s18 = sshll.u32 (%p3936_p3), %s244_s14, 3 }
  0x1f   : > { %s3976_s9 = scalar_lea.vmem (%p3936_p3), %s5050_s1, %s3135_s18 }
  0x20   : > { %v305_v0 = vld [vmem:[%s3976_s9] sm:$0xff]  ;;  %v307_v1 = vld [vmem:[%s3976_s9 + $0x10] sm:$0xff] }
  0x21   : > { %v309_v2 = vld [vmem:[%s3976_s9 + $0x20] sm:$0xff]  ;;  %306 = vst [vmem:[%s241_s13] sm:$0xff] %v305_v0  ;;  %308 = vst [vmem:[%s241_s13 + $0x8] sm:$0xff] %v307_v1  ;;  %v311_v3 = vld [vmem:[%s3976_s9 + $0x30] sm:$0xff] }
  0x22   : > { %310 = vst [vmem:[%s241_s13 + $0x10] sm:$0xff] %v309_v2  ;;  %v313_v4 = vld [vmem:[%s3976_s9 + $0x40] sm:$0xff]  ;;  %v315_v5 = vld [vmem:[%s3976_s9 + $0x50] sm:$0xff]  ;;  %312 = vst [vmem:[%s241_s13 + $0x18] sm:$0xff] %v311_v3 }
  0x23   : > { %314 = vst [vmem:[%s241_s13 + $0x20] sm:$0xff] %v313_v4  ;;  %316 = vst [vmem:[%s241_s13 + $0x28] sm:$0xff] %v315_v5  ;;  %v317_v6 = vld [vmem:[%s3976_s9 + $0x60] sm:$0xff]  ;;  %v319_v7 = vld [vmem:[%s3976_s9 + $0x70] sm:$0xff] }
  0x24   : > { %v321_v8 = vld [vmem:[%s3976_s9 + $0x80] sm:$0xff]  ;;  %318 = vst [vmem:[%s241_s13 + $0x30] sm:$0xff] %v317_v6  ;;  %320 = vst [vmem:[%s241_s13 + $0x38] sm:$0xff] %v319_v7  ;;  %v323_v9 = vld [vmem:[%s3976_s9 + $0x90] sm:$0xff] }
  0x25   : > { %322 = vst [vmem:[%s241_s13 + $0x40] sm:$0xff] %v321_v8  ;;  %v325_v10 = vld [vmem:[%s3976_s9 + $0xa0] sm:$0xff]  ;;  %v327_v11 = vld [vmem:[%s3976_s9 + $0xb0] sm:$0xff]  ;;  %324 = vst [vmem:[%s241_s13 + $0x48] sm:$0xff] %v323_v9 }
  0x26   : > { %326 = vst [vmem:[%s241_s13 + $0x50] sm:$0xff] %v325_v10  ;;  %328 = vst [vmem:[%s241_s13 + $0x58] sm:$0xff] %v327_v11  ;;  %v329_v12 = vld [vmem:[%s3976_s9 + $0xc0] sm:$0xff]  ;;  %v331_v13 = vld [vmem:[%s3976_s9 + $0xd0] sm:$0xff] }
  0x27   : > { %v333_v14 = vld [vmem:[%s3976_s9 + $0xe0] sm:$0xff]  ;;  %330 = vst [vmem:[%s241_s13 + $0x60] sm:$0xff] %v329_v12  ;;  %332 = vst [vmem:[%s241_s13 + $0x68] sm:$0xff] %v331_v13  ;;  %v335_v15 = vld [vmem:[%s3976_s9 + $0xf0] sm:$0xff] }
  0x28   : > { %334 = vst [vmem:[%s241_s13 + $0x70] sm:$0xff] %v333_v14  ;;  %336 = vst [vmem:[%s241_s13 + $0x78] sm:$0xff] %v335_v15 }
  0x29 PF: > { %342 = sbr.rel (!%p3945_p7) target bundleno = 49 (0x31), region = 74  ;;  %s344_s10 = sand.u32 (%p3945_p7), 1, %s3801_s23  }
  0x2a   : > { %s3249_s12 = sshll.u32 (%p3945_p7), %s3825_s29, 5  ;;  %s3136_s17 = sshll.u32 (%p3945_p7), %s344_s10, 6 }
  0x2b   : > { %s349_s18 = scalar_lea.vmem (%p3945_p7), %s5051_s2, %s3249_s12  ;;  %s346_s11 = scalar_lea.vmem (%p3945_p7), [#allocation3], %s3136_s17 }
  0x2c   : > { %v362_v16 = vld [vmem:[%s349_s18] sm:$0xff] (%p3945_p7)  ;;  %v364_v17 = vld [vmem:[%s349_s18 + $0x8] sm:$0xff] (%p3945_p7)  ;;  %v366_v18 = vld [vmem:[%s349_s18 + $0x10] sm:$0xff] (%p3945_p7) }
  0x2d   : > { %363 = vst [vmem:[%s346_s11] sm:$0xff] (%p3945_p7), %v362_v16  ;;  %365 = vst [vmem:[%s346_s11 + $0x8] sm:$0xff] (%p3945_p7), %v364_v17  ;;  %v368_v19 = vld [vmem:[%s349_s18 + $0x18] sm:$0xff] (%p3945_p7)  ;;  %v370_v20 = vld [vmem:[%s349_s18 + $0x40] sm:$0xff] (%p3945_p7) }
  0x2e   : > { %367 = vst [vmem:[%s346_s11 + $0x10] sm:$0xff] %v366_v18  ;;  %v372_v21 = vld [vmem:[%s349_s18 + $0x48] sm:$0xff]  ;;  %369 = vst [vmem:[%s346_s11 + $0x18] sm:$0xff] %v368_v19  ;;  %v374_v22 = vld [vmem:[%s349_s18 + $0x50] sm:$0xff] }
  0x2f   : > { %371 = vst [vmem:[%s346_s11 + $0x20] sm:$0xff] %v370_v20  ;;  %373 = vst [vmem:[%s346_s11 + $0x28] sm:$0xff] %v372_v21  ;;  %v376_v23 = vld [vmem:[%s349_s18 + $0x58] sm:$0xff] }
  0x30   : > { %375 = vst [vmem:[%s346_s11 + $0x30] sm:$0xff] %v374_v22  ;;  %377 = vst [vmem:[%s346_s11 + $0x38] sm:$0xff] %v376_v23 }
  0x31 PF: > { %p3139_p1 = scmp.ge.s32.totalorder %s3829_s30, 1  ;;  %p382_p2 = scmp.lt.s32.totalorder %s3829_s30, 5 }
  0x33   : > { %p383_p3 = pnand %p3139_p1, %p382_p2 }
  0x34   : > { %s396_s9 = sand.u32 (!%p383_p3), 1, %s3797_s22   ;;  %s3143_s15 = sshll.u32 (!%p383_p3), %s3813_s26, 1 }
  0x35   : > { %386 = sbr.rel (%p383_p3) target bundleno = 1137 (0x471), region = 97  ;;  %s3141_s13 = sshll.u32 (!%p383_p3), %s396_s9, 6 }
  0x36   : > { %p435_p4 = scmp.lt.s32.totalorder (!%p383_p3), %s3143_s15, 3  ;;  %s389_s10 = sand.u32 (!%p383_p3), 1, %s3805_s24  }
  0x37   : > { %s4012_s12 = scalar_lea.vmem (!%p383_p3), [#allocation3], %s3141_s13  ;;  %s4020_s22 = sshll.u32 (!%p383_p3), %s389_s10, 7 }
  0x38   : > { %s4030_s13 = scalar_lea.vmem (!%p383_p3), [#allocation2], %s4020_s22  ;;  %s4453_s8 = scalar_lea.vmem (!%p383_p3), [#allocation4], %s4020_s22 }
  0x39   : > { %s3015_s22 = sshll.u32 (!%p383_p3), %s4453_s8, 4  ;;  %s4985_s22 = int_to_ptr.vmem [resolvable:$true] %s3015_s22 }
  0x3a   : > { %v3831_v24 = vmov 0.0   ;;  %vm3832_vm0 = vmmov 0   ;;  %v497_v25 = vld [vmem:[%s4012_s12] sm:$0xf]  ;;  %v899_v27 = vld [vmem:[%s4012_s12 + $0x4] sm:$0xf] }
  0x3b   : > { %3355 = vmatprep.subr.bf16.mxu0 %v3831_v24  ;;  %3387 = vmatprep.subr.bf16.mxu1 %v3831_v24  ;;  %v498_v26 = vld [vmem:[%s4012_s12 + $0x20] sm:$0xf]  ;;  %v900_v29 = vld [vmem:[%s4012_s12 + $0x24] sm:$0xf]  ;;  %s5083_s15 = smov (!%p435_p4, %s3143_s15), 3  ;;  %vm623_vm1 = vcmask 1041408  }
  0x3c   : > { %3357 = vmatprep.mubr.msk.bf16.mxu0 %vm3832_vm0, %v3831_v24  ;;  %3389 = vmatprep.mubr.msk.bf16.mxu1 %vm3832_vm0, %v3831_v24  ;;  %v3145_v28 = vcombine.low %v497_v25, %v498_v26  ;;  %v3165_v30 = vcombine.low %v899_v27, %v900_v29  ;;  %s3144_s17 = sshll.u32 %s5083_s15, 3  ;;  %v495_v31 = vld [vmem:[%s5053_s4] sm:$0x3]  ;;  %vm505_vm2 = vcmask 130048   ;;  %v448_v33 = vld [vmem:[%s4030_s13 + $0x8] sm:$0xff]  ;;  %v449_v34 = vld [vmem:[%s4030_s13 + $0x10] sm:$0xff] }
  0x3d   : > { %s438_s9 = scalar_lea.vmem %s5049_s0, %s3144_s17  ;;  %v447_v32 = vld [vmem:[%s4030_s13] sm:$0xff]  ;;  %v450_v37 = vld [vmem:[%s4030_s13 + $0x18] sm:$0xff]  ;;  %v464_v39 = vpack.c.bf16 %v448_v33, %v448_v33  ;;  %v465_v40 = vpack.c.bf16 %v449_v34, %v449_v34  ;;  %vm584_vm3 = vcmask 1041409   ;;  %v4040_v42 = vsel %vm623_vm1, %v495_v31, 0  ;;  %v452_v44 = vld [vmem:[%s4030_s13 + $0x28] sm:$0xff]  ;;  %s3834_s15 = smov [#allocation4]  }
  0x3e   : > { %3356 = vmatpush3.bf16.msra.mxu0 %v3145_v28  ;;  %3388 = vmatpush3.bf16.msra.mxu1 %v3165_v30  ;;  %v444_v35 = vld [vmem:[%s438_s9] sm:$0xff]  ;;  %v445_v36 = vld [vmem:[%s438_s9 + $0x8] sm:$0xff]  ;;  %v463_v38 = vpack.c.bf16 %v447_v32, %v447_v32  ;;  %v453_v45 = vld [vmem:[%s4030_s13 + $0x30] sm:$0xff]  ;;  %v466_v46 = vpack.c.bf16 %v450_v37, %v450_v37  ;;  %vm587_vm4 = vcmask 1042434   ;;  %v468_v51 = vpack.c.bf16 %v452_v44, %v452_v44  ;;  %s4992_s9 = scalar_lea.sflag [#allocation5], %s389_s10  ;;  %s3725_s17 = sshll.u32 %s3834_s15, 4  ;;  %s3726_s17 = int_to_ptr.vmem [resolvable:$false] %s3725_s17 }
  0x3f   : > { %3361 = vmatprep.subr.bf16.mxu0 %v3831_v24  ;;  %3393 = vmatprep.subr.bf16.mxu1 %v3831_v24  ;;  %v4037_v41 = vpack.c.bf16 %v445_v36, %v444_v35  ;;  %v451_v43 = vld [vmem:[%s4030_s13 + $0x20] sm:$0xff]  ;;  %v454_v47 = vld [vmem:[%s4030_s13 + $0x38] sm:$0xff]  ;;  %v456_v49 = vld [vmem:[%s4030_s13 + $0x48] sm:$0xff]  ;;  %v469_v52 = vpack.c.bf16 %v453_v45, %v453_v45  ;;  %vm590_vm5 = vcmask 1043459   ;;  %v4057_v60 = vunpack.c.l.b16 %v464_v39  ;;  %p3728_p9 = scmp.lt.s32.totalorder %s4985_s22, %s3726_s17 }
  0x40   : > { %v455_v48 = vld [vmem:[%s4030_s13 + $0x40] sm:$0xff]  ;;  %v467_v50 = vpack.c.bf16 %v451_v43, %v451_v43  ;;  %v4048_v53 = vunpack.c.l.b16 %v463_v38  ;;  %v457_v54 = vld [vmem:[%s4030_s13 + $0x50] sm:$0xff]  ;;  %v458_v55 = vld [vmem:[%s4030_s13 + $0x58] sm:$0xff]  ;;  %v470_v57 = vpack.c.bf16 %v454_v47, %v454_v47  ;;  %v472_v59 = vpack.c.bf16 %v456_v49, %v456_v49 }
  0x41   : > { %3358 = vmatmul.mubr.msk.bf16.vlgmr.msra.gmra.mxu0 %vm505_vm2, %v4037_v41  ;;  %3390 = vmatmul.mubr.msk.bf16.vlgmr.msra.gmra.mxu1 %vm505_vm2, %v4037_v41  ;;  %v459_v56 = vld [vmem:[%s4030_s13 + $0x60] sm:$0xff]  ;;  %v471_v58 = vpack.c.bf16 %v455_v48, %v455_v48  ;;  %vm593_vm6 = vcmask 1044484   ;;  %v460_v61 = vld [vmem:[%s4030_s13 + $0x68] sm:$0xff]  ;;  %v461_v62 = vld [vmem:[%s4030_s13 + $0x70] sm:$0xff]  ;;  %v473_v0 = vpack.c.bf16 %v457_v54, %v457_v54  ;;  %v474_v1 = vpack.c.bf16 %v458_v55, %v458_v55 }
  0x42   : > { %3362 = vmatpush3.bf16.msra.mxu0 %v4040_v42  ;;  %3394 = vmatpush3.bf16.msra.mxu1 %v4040_v42  ;;  %v462_v63 = vld [vmem:[%s4030_s13 + $0x78] sm:$0xff]  ;;  %v475_v2 = vpack.c.bf16 %v459_v56, %v459_v56  ;;  %v4064_v3 = vunpack.c.l.b16 %v465_v40  ;;  %vm596_vm7 = vcmask 1045509   ;;  %v476_v4 = vpack.c.bf16 %v460_v61, %v460_v61  ;;  %s3721_s13 = scalar_lea.vmem %s4985_s22, 2048 }
  0x43   : > { %3363 = vmatprep.mubr.msk.bf16.mxu0 %vm3832_vm0, %v3831_v24  ;;  %3395 = vmatprep.mubr.msk.bf16.mxu1 %vm3832_vm0, %v3831_v24  ;;  %v477_v5 = vpack.c.bf16 %v461_v62, %v461_v62  ;;  %v478_v6 = vpack.c.bf16 %v462_v63, %v462_v63  ;;  %v4070_v7 = vunpack.c.l.b16 %v466_v46  ;;  %vm599_vm8 = vcmask 1046534   ;;  %p3722_p5 = scmp.ne.s32.totalorder %s4985_s22, %s3721_s13 }
  0x44   : > { %v4072_v8 = vunpack.c.l.b16 %v467_v50  ;;  %v4074_v9 = vunpack.c.l.b16 %v468_v51  ;;  %v4076_v10 = vunpack.c.l.b16 %v469_v52  ;;  %v4078_v11 = vunpack.c.l.b16 %v470_v57  ;;  %3367 = vmatprep.subr.bf16.mxu0 %v3831_v24  ;;  %3399 = vmatprep.subr.bf16.mxu1 %v3831_v24 }
  0x45   : > { %vm602_vm9 = vcmask 1047559   ;;  %v4082_v12 = vunpack.c.l.b16 %v471_v58  ;;  %v4084_v13 = vunpack.c.l.b16 %v472_v59  ;;  %v4086_v14 = vunpack.c.l.b16 %v473_v0  ;;  %v4143_v0 = vld [vmem:[%s5052_s3 + $0x38] sm:$0xff]   ;;  %p3723_p6 = pnand %p3722_p5, %p3949_p8 }
  0x46   : > { %v4088_v15 = vunpack.c.l.b16 %v474_v1  ;;  %v4090_v16 = vunpack.c.l.b16 %v475_v2  ;;  %v4092_v17 = vunpack.c.l.b16 %v476_v4  ;;  %v4094_v18 = vunpack.c.l.b16 %v477_v5 }
  0x47   : > { %v4096_v19 = vunpack.c.l.b16 %v478_v6  ;;  %v583_v20 = vrot.slane %v4057_v60, 7  ;;  %v586_v21 = vrot.slane %v4064_v3, 6  ;;  %v589_v22 = vrot.slane %v4070_v7, 5  ;;  %p3724_p7 = pneg %p3723_p6 }
  0x48   : > { %v592_v23 = vrot.slane %v4072_v8, 4  ;;  %v595_v25 = vrot.slane %v4074_v9, 3  ;;  %v598_v26 = vrot.slane %v4076_v10, 2  ;;  %v601_v27 = vrot.slane %v4078_v11, 1 }
  0x49   : > { %v604_v28 = vrot.slane %v4084_v13, 7  ;;  %v585_v29 = vsel %vm584_vm3, %v583_v20, %v4048_v53  ;;  %v606_v30 = vrot.slane %v4086_v14, 6  ;;  %v608_v31 = vrot.slane %v4088_v15, 5 }
  0x4a   : > { %v610_v32 = vrot.slane %v4090_v16, 4  ;;  %v588_v33 = vsel %vm587_vm4, %v586_v21, %v585_v29  ;;  %v612_v35 = vrot.slane %v4092_v17, 3  ;;  %v614_v36 = vrot.slane %v4094_v18, 2  ;;  %v4163_v29 = vld [vmem:[%s5052_s3 + $0x30] sm:$0xff]  }
  0x4b   : > { %v605_v34 = vsel %vm584_vm3, %v604_v28, %v4082_v12  ;;  %v591_v37 = vsel %vm590_vm5, %v589_v22, %v588_v33  ;;  %v616_v39 = vrot.slane %v4096_v19, 1  ;;  %v949_v40 = vrot.slane %v4048_v53, 1 }
  0x4c   : > { %v607_v38 = vsel %vm587_vm4, %v606_v30, %v605_v34  ;;  %v594_v43 = vsel %vm593_vm6, %v592_v23, %v591_v37  ;;  %v951_v45 = vrot.slane %v4064_v3, 7  ;;  %v953_v46 = vrot.slane %v4070_v7, 6  ;;  %v4186_v37 = vld [vmem:[%s5052_s3 + $0x20] sm:$0xff]  }
  0x4d   : > { %v609_v44 = vsel %vm590_vm5, %v608_v31, %v607_v38  ;;  %v597_v47 = vsel %vm596_vm7, %v595_v25, %v594_v43  ;;  %v950_v49 = vsel %vm584_vm3, %v4057_v60, %v949_v40  ;;  %v955_v50 = vrot.slane %v4072_v8, 5  ;;  %v4197_v38 = vld [vmem:[%s5052_s3 + $0x18] sm:$0xff]   ;;  %v4215_v40 = vld [vmem:[%s5052_s3 + $0x8] sm:$0xff]   ;;  %v4230_v43 = vld [vmem:[%s5052_s3] sm:$0xff]  }
  0x4e   : > { %v611_v48 = vsel %vm593_vm6, %v610_v32, %v609_v44  ;;  %v600_v51 = vsel %vm599_vm8, %v598_v26, %v597_v47  ;;  %v952_v54 = vsel %vm587_vm4, %v951_v45, %v950_v49  ;;  %v957_v55 = vrot.slane %v4074_v9, 4 }
  0x4f   : > { %v613_v52 = vsel %vm596_vm7, %v612_v35, %v611_v48  ;;  %v603_v56 = vsel %vm602_vm9, %v601_v27, %v600_v51  ;;  %v954_v58 = vsel %vm590_vm5, %v953_v46, %v952_v54  ;;  %v959_v59 = vrot.slane %v4076_v10, 3  ;;  %v4177_v35 = vld [vmem:[%s5052_s3 + $0x28] sm:$0xff]  }
  0x50   : > { %v615_v57 = vsel %vm599_vm8, %v614_v36, %v613_v52  ;;  %vm619_vm10 = vcmask 31744   ;;  %v956_v62 = vsel %vm593_vm6, %v955_v50, %v954_v58  ;;  %v963_v63 = vrot.slane %v4082_v12, 1 }
  0x51   : > { %v617_v61 = vsel %vm602_vm9, %v616_v39, %v615_v57  ;;  %v958_v2 = vsel %vm596_vm7, %v957_v55, %v956_v62  ;;  %v965_v4 = vrot.slane %v4086_v14, 7  ;;  %v967_v5 = vrot.slane %v4088_v15, 6  ;;  %v4206_v39 = vld [vmem:[%s5052_s3 + $0x10] sm:$0xff]  }
  0x52   : > { %v618_v1 = vpack.c.b16 %v617_v61, %v603_v56  ;;  %v961_v6 = vrot.slane %v4078_v11, 2  ;;  %v964_v20 = vsel %vm584_vm3, %v4084_v13, %v963_v63  ;;  %v969_v21 = vrot.slane %v4090_v16, 5  ;;  %v1200_v61 = vld [vmem:[%s4012_s12 + $0x28] sm:$0xf] }
  0x53   : > { %v971_v22 = vrot.slane %v4092_v17, 4  ;;  %v960_v23 = vsel %vm599_vm8, %v959_v59, %v958_v2  ;;  %v966_v25 = vsel %vm587_vm4, %v965_v4, %v964_v20  ;;  %v973_v26 = vrot.slane %v4094_v18, 3  ;;  %v1199_v59 = vld [vmem:[%s4012_s12 + $0x8] sm:$0xf] }
  0x54   : > { %3364 = vmatmul.mubr.msk.bf16.vlgmr.msra.gmra.mxu0 %vm619_vm10, %v618_v1  ;;  %v968_v27 = vsel %vm590_vm5, %v967_v5, %v966_v25  ;;  %v975_v28 = vrot.slane %v4096_v19, 2  ;;  %v962_v31 = vsel %vm602_vm9, %v961_v6, %v960_v23  ;;  %v1249_v44 = vrot.slane %v4048_v53, 2  ;;  %v1499_v5 = vld [vmem:[%s4012_s12 + $0xc] sm:$0xf] }
  0x55   : > { %3368 = vmatpush3.bf16.msra.mxu0 %v4143_v0  ;;  %3383 = vmatprep.mubr.msk.bf16.mxu0 %vm3832_vm0, %v3831_v24  ;;  %v970_v30 = vsel %vm593_vm6, %v969_v21, %v968_v27  ;;  %v1250_v45 = vrot.slane %v4057_v60, 1  ;;  %v1263_v46 = vrot.slane %v4082_v12, 2  ;;  %v1264_v47 = vrot.slane %v4084_v13, 1  ;;  %v1500_v6 = vld [vmem:[%s4012_s12 + $0x2c] sm:$0xf] }
  0x56   : > { %3369 = vmatprep.subr.bf16.mxu0 %v3831_v24  ;;  %v972_v32 = vsel %vm596_vm7, %v971_v22, %v970_v30  ;;  %v1549_v48 = vrot.slane %v4048_v53, 3  ;;  %v1550_v49 = vrot.slane %v4057_v60, 2  ;;  %v1563_v50 = vrot.slane %v4082_v12, 3 }
  0x57   : > { %v974_v33 = vsel %vm599_vm8, %v973_v26, %v972_v32  ;;  %v1564_v51 = vrot.slane %v4084_v13, 2  ;;  %v1251_v52 = vsel %vm584_vm3, %v1250_v45, %v1249_v44  ;;  %v1552_v54 = vrot.slane %v4064_v3, 1 }
  0x58   : > { %v976_v34 = vsel %vm602_vm9, %v975_v28, %v974_v33  ;;  %v1566_v55 = vrot.slane %v4086_v14, 1  ;;  %v1265_v56 = vsel %vm584_vm3, %v1264_v47, %v1263_v46  ;;  %v1551_v57 = vsel %vm584_vm3, %v1550_v49, %v1549_v48 }
  0x59   : > { %3370 = vmatpush3.bf16.msra.mxu0 %v4163_v29  ;;  %v977_v36 = vpack.c.b16 %v976_v34, %v962_v31  ;;  %v1565_v58 = vsel %vm584_vm3, %v1564_v51, %v1563_v50  ;;  %v1253_v62 = vrot.slane %v4070_v7, 7  ;;  %v1252_v2 = vsel %vm587_vm4, %v4064_v3, %v1251_v52 }
  0x5a   : > { %3371 = vmatprep.subr.bf16.mxu0 %v3831_v24  ;;  %v1267_v4 = vrot.slane %v4088_v15, 7  ;;  %v1266_v20 = vsel %vm587_vm4, %v4086_v14, %v1265_v56  ;;  %v1553_v21 = vsel %vm587_vm4, %v1552_v54, %v1551_v57  ;;  %v1567_v22 = vsel %vm587_vm4, %v1566_v55, %v1565_v58 }
  0x5b   : > { %3396 = vmatmul.mubr.msk.bf16.vlgmr.msra.gmra.mxu1 %vm619_vm10, %v977_v36  ;;  %v3176_v26 = vcombine.low %v1199_v59, %v1200_v61  ;;  %v1255_v27 = vrot.slane %v4072_v8, 6  ;;  %v1254_v28 = vsel %vm590_vm5, %v1253_v62, %v1252_v2  ;;  %v1269_v30 = vrot.slane %v4090_v16, 6 }
  0x5c   : > { %3400 = vmatpush3.bf16.msra.mxu1 %v4143_v0  ;;  %3415 = vmatprep.mubr.msk.bf16.mxu1 %vm3832_vm0, %v3831_v24  ;;  %v1555_v31 = vrot.slane %v4072_v8, 7  ;;  %v1569_v32 = vrot.slane %v4090_v16, 7  ;;  %v3187_v36 = vcombine.low %v1499_v5, %v1500_v6  ;;  %v1268_v44 = vsel %vm590_vm5, %v1267_v4, %v1266_v20 }
  0x5d   : > { %3372 = vmatpush3.bf16.msra.mxu0 %v4177_v35  ;;  %3401 = vmatprep.subr.bf16.mxu1 %v3831_v24  ;;  %v1554_v45 = vsel %vm590_vm5, %v4070_v7, %v1553_v21  ;;  %v1568_v46 = vsel %vm590_vm5, %v4088_v15, %v1567_v22  ;;  %v1257_v49 = vrot.slane %v4074_v9, 5  ;;  %v1256_v52 = vsel %vm593_vm6, %v1255_v27, %v1254_v28 }
  0x5e   : > { %3373 = vmatprep.subr.bf16.mxu0 %v3831_v24  ;;  %v1271_v54 = vrot.slane %v4092_v17, 5  ;;  %v1557_v55 = vrot.slane %v4074_v9, 6  ;;  %v1571_v56 = vrot.slane %v4092_v17, 6  ;;  %v1270_v57 = vsel %vm593_vm6, %v1269_v30, %v1268_v44 }
  0x5f   : > { %v1556_v58 = vsel %vm593_vm6, %v1555_v31, %v1554_v45  ;;  %v1570_v59 = vsel %vm593_vm6, %v1569_v32, %v1568_v46  ;;  %v1259_v61 = vrot.slane %v4076_v10, 4  ;;  %v1258_v62 = vsel %vm596_vm7, %v1257_v49, %v1256_v52 }
  0x60   : > { %3402 = vmatpush3.bf16.msra.mxu1 %v4163_v29  ;;  %v1573_v2 = vrot.slane %v4094_v18, 5  ;;  %v1272_v4 = vsel %vm596_vm7, %v1271_v54, %v1270_v57  ;;  %v1558_v5 = vsel %vm596_vm7, %v1557_v55, %v1556_v58  ;;  %v1572_v6 = vsel %vm596_vm7, %v1571_v56, %v1570_v59 }
  0x61   : > { %3374 = vmatpush3.bf16.msra.mxu0 %v4186_v37  ;;  %3403 = vmatprep.subr.bf16.mxu1 %v3831_v24  ;;  %v1261_v20 = vrot.slane %v4078_v11, 3  ;;  %v1260_v21 = vsel %vm599_vm8, %v1259_v61, %v1258_v62  ;;  %v1275_v22 = vrot.slane %v4096_v19, 3  ;;  %v1849_v52 = vrot.slane %v4048_v53, 4 }
  0x62   : > { %3375 = vmatprep.subr.bf16.mxu0 %v3831_v24  ;;  %v1574_v28 = vsel %vm599_vm8, %v1573_v2, %v1572_v6  ;;  %v1850_v54 = vrot.slane %v4057_v60, 3  ;;  %v1863_v55 = vrot.slane %v4082_v12, 4  ;;  %v1864_v56 = vrot.slane %v4084_v13, 3 }
  0x63   : > { %v1262_v30 = vsel %vm602_vm9, %v1261_v20, %v1260_v21  ;;  %v3833_v57 = vmov 1966171168   ;;  %v773_v59 = vlaneseq  ;;  %v1852_v62 = vrot.slane %v4064_v3, 2 }
  0x64   : > { %3404 = vmatpush3.bf16.msra.mxu1 %v4177_v35  ;;  %v771_v58 = vunpack.c.l.s4 %v3833_v57  ;;  %v1851_v61 = vsel %vm584_vm3, %v1850_v54, %v1849_v52  ;;  %v2149_v2 = vrot.slane %v4048_v53, 5  ;;  %v2164_v6 = vrot.slane %v4084_v13, 4 }
  0x65   : > { %3376 = vmatpush3.bf16.msra.mxu0 %v4197_v38  ;;  %3405 = vmatprep.subr.bf16.mxu1 %v3831_v24  ;;  %v1854_v20 = vrot.slane %v4070_v7, 1  ;;  %v1868_v21 = vrot.slane %v4088_v15, 1  ;;  %v2168_v52 = vrot.slane %v4088_v15, 2 }
  0x66   : > { %3377 = vmatprep.subr.bf16.mxu0 %v3831_v24 }
  0x68   : > { %3406 = vmatpush3.bf16.msra.mxu1 %v4186_v37 }
  0x69   : > { %3378 = vmatpush3.bf16.msra.mxu0 %v4206_v39  ;;  %3407 = vmatprep.subr.bf16.mxu1 %v3831_v24 }
  0x6a   : > { %3379 = vmatprep.subr.bf16.mxu0 %v3831_v24 }
  0x6c   : > { %3408 = vmatpush3.bf16.msra.mxu1 %v4197_v38 }
  0x6d   : > { %3380 = vmatpush3.bf16.msra.mxu0 %v4215_v40  ;;  %3409 = vmatprep.subr.bf16.mxu1 %v3831_v24 }
  0x6e   : > { %3381 = vmatprep.subr.bf16.mxu0 %v3831_v24 }
  0x70   : > { %3410 = vmatpush3.bf16.msra.mxu1 %v4206_v39 }
  0x71   : > { %3411 = vmatprep.subr.bf16.mxu1 %v3831_v24  ;;  %3382 = vmatpush3.bf16.msra.mxu0 %v4230_v43 }
  0x72   : > { %3419 = vmatprep.subr.bf16.mxu0 %v3831_v24 }
  0x74   : > { %3412 = vmatpush3.bf16.msra.mxu1 %v4215_v40 }
  0x75   : > { %3413 = vmatprep.subr.bf16.mxu1 %v3831_v24 }
  0x78   : > { %3414 = vmatpush3.bf16.msra.mxu1 %v4230_v43 }
  0x79   : > { %3451 = vmatprep.subr.bf16.mxu1 %v3831_v24 }
 0x101   : > { %v543_v63 = vpop.f32.mrf.mxu0  ;;  %v941_v1 = vpop.f32.mrf.mxu1 }
 0x103   : > { %v3359_v23 = vpop.f32.mrf.mxu0  ;;  %v3391_v25 = vpop.f32.mrf.mxu1 }
 0x104   : > { %v1561_v23 = vrot.slane %v4078_v11, 4  ;;  %v1575_v25 = vrot.slane %v4096_v19, 4 }
 0x105   : > { %v546_v33 = vpop.f32.mrf.mxu0  ;;  %v944_v34 = vpop.f32.mrf.mxu1 }
 0x106   : > { %v550_v47 = vpack.c.bf16 %v546_v33, %v543_v63  ;;  %v948_v48 = vpack.c.bf16 %v944_v34, %v941_v1  ;;  %v1273_v63 = vrot.slane %v4094_v18, 4  ;;  %v1559_v1 = vrot.slane %v4076_v10, 5 }
 0x107   : > { %v3360_v50 = vpop.f32.mrf.mxu0  ;;  %v3392_v51 = vpop.f32.mrf.mxu1  ;;  %v1576_v33 = vsel %vm602_vm9, %v1575_v25, %v1574_v28  ;;  %v2152_v25 = vrot.slane %v4064_v3, 3  ;;  %v774_v28 = vshrl.u32 %v773_v59, 7 }
 0x108   : > { %3384 = vmatmul.mubr.bf16.vlgmr.msra.gmra.mxu0 %v550_v47  ;;  %3416 = vmatmul.mubr.bf16.vlgmr.msra.gmra.mxu1 %v948_v48  ;;  %v1560_v27 = vsel %vm599_vm8, %v1559_v1, %v1558_v5  ;;  %v1866_v1 = vrot.slane %v4086_v14, 2  ;;  %v2163_v5 = vrot.slane %v4082_v12, 5 }
 0x109   : > { %3420 = vmatpush3.bf16.msra.mxu0 %v3176_v26  ;;  %3452 = vmatpush3.bf16.msra.mxu1 %v3187_v36  ;;  %v1274_v26 = vsel %vm599_vm8, %v1273_v63, %v1272_v4  ;;  %v1562_v32 = vsel %vm602_vm9, %v1561_v23, %v1560_v27  ;;  %v1865_v63 = vsel %vm584_vm3, %v1864_v56, %v1863_v55  ;;  %v2150_v4 = vrot.slane %v4057_v60, 4 }
 0x10a   : > { %3421 = vmatprep.mubr.msk.bf16.mxu0 %vm3832_vm0, %v3831_v24  ;;  %3453 = vmatprep.mubr.msk.bf16.mxu1 %vm3832_vm0, %v3831_v24  ;;  %v1276_v31 = vsel %vm602_vm9, %v1275_v22, %v1274_v26  ;;  %v1577_v44 = vpack.c.b16 %v1576_v33, %v1562_v32  ;;  %v1853_v22 = vsel %vm587_vm4, %v1852_v62, %v1851_v61  ;;  %v2166_v26 = vrot.slane %v4086_v14, 3  ;;  %v4385_v32 = vld [vmem:[%s4012_s12 + $0x10] sm:$0xf] }
 0x10b   : > { %3425 = vmatprep.subr.bf16.mxu0 %v3831_v24  ;;  %3457 = vmatprep.subr.bf16.mxu1 %v3831_v24  ;;  %v1277_v36 = vpack.c.b16 %v1276_v31, %v1262_v30  ;;  %v1867_v23 = vsel %vm587_vm4, %v1866_v1, %v1865_v63  ;;  %v772_v27 = vunpack.c.0.s8 %v771_v58  ;;  %v2151_v30 = vsel %vm584_vm3, %v2150_v4, %v2149_v2  ;;  %v4388_v33 = vld [vmem:[%s4012_s12 + $0x30] sm:$0xf]  ;;  %v4415_v4 = vld [vmem:[%s4012_s12 + $0x34] sm:$0xf] }
 0x10c   : > { %v2165_v31 = vsel %vm584_vm3, %v2164_v6, %v2163_v5  ;;  %v2153_v56 = vsel %vm587_vm4, %v2152_v25, %v2151_v30  ;;  %v3198_v62 = vcombine.low %v4385_v32, %v4388_v33  ;;  %v1857_v63 = vrot.slane %v4074_v9, 7 }
 0x10d   : > { %v2167_v57 = vsel %vm587_vm4, %v2166_v26, %v2165_v31  ;;  %v4403_v58 = vsub.s32 %v772_v27, %v774_v28  ;;  %v1871_v1 = vrot.slane %v4092_v17, 7  ;;  %v2170_v26 = vrot.slane %v4090_v16, 1 }
 0x10e   : > { %v2169_v25 = vsel %vm590_vm5, %v2168_v52, %v2167_v57 }
 0x110   : > { %3422 = vmatmul.mubr.msk.bf16.vlgmr.msra.gmra.mxu0 %vm505_vm2, %v4037_v41  ;;  %3454 = vmatmul.mubr.msk.bf16.vlgmr.msra.gmra.mxu1 %vm505_vm2, %v4037_v41 }
 0x111   : > { %3426 = vmatpush3.bf16.msra.mxu0 %v4040_v42  ;;  %3458 = vmatpush3.bf16.msra.mxu1 %v4040_v42 }
 0x112   : > { %3427 = vmatprep.mubr.msk.bf16.mxu0 %vm3832_vm0, %v3831_v24  ;;  %3459 = vmatprep.mubr.msk.bf16.mxu1 %vm3832_vm0, %v3831_v24 }
 0x113   : > { %3431 = vmatprep.subr.bf16.mxu0 %v3831_v24  ;;  %3463 = vmatprep.subr.bf16.mxu1 %v3831_v24 }
 0x114   : > { %v4316_v34 = vpop.f32.mrf.mxu0 }
 0x116   : > { %v3365_v45 = vpop.f32.mrf.mxu0 }
 0x118   : > { %v4320_v46 = vpop.f32.mrf.mxu0  ;;  %3428 = vmatmul.mubr.msk.bf16.vlgmr.msra.gmra.mxu0 %vm619_vm10, %v1277_v36  ;;  %3460 = vmatmul.mubr.msk.bf16.vlgmr.msra.gmra.mxu1 %vm619_vm10, %v1577_v44  ;;  %v4393_v36 = vld [vmem:[%s5054_s5] ss:$0 sm:$0xff] }
 0x119   : > { %3432 = vmatpush3.bf16.msra.mxu0 %v4143_v0  ;;  %3464 = vmatpush3.bf16.msra.mxu1 %v4143_v0 }
 0x11a   : > { %v3366_v47 = vpop.f32.mrf.mxu0  ;;  %3433 = vmatprep.subr.bf16.mxu0 %v3831_v24  ;;  %3465 = vmatprep.subr.bf16.mxu1 %v3831_v24 }
 0x11b   : > { %v4328_v48 = vpop.f32.mrf.mxu1  ;;  %3447 = vmatprep.mubr.msk.bf16.mxu0 %vm3832_vm0, %v3831_v24  ;;  %3479 = vmatprep.mubr.msk.bf16.mxu1 %vm3832_vm0, %v3831_v24  ;;  %v1855_v47 = vsel %vm590_vm5, %v1854_v20, %v1853_v22 }
 0x11c   : > { %v1856_v5 = vsel %vm593_vm6, %v4072_v8, %v1855_v47 }
 0x11d   : > { %v3397_v49 = vpop.f32.mrf.mxu1  ;;  %3434 = vmatpush3.bf16.msra.mxu0 %v4163_v29  ;;  %3466 = vmatpush3.bf16.msra.mxu1 %v4163_v29 }
 0x11e   : > { %3435 = vmatprep.subr.bf16.mxu0 %v3831_v24  ;;  %3467 = vmatprep.subr.bf16.mxu1 %v3831_v24  ;;  %v1869_v49 = vsel %vm590_vm5, %v1868_v21, %v1867_v23  ;;  %v2156_v23 = vrot.slane %v4072_v8, 1 }
 0x11f   : > { %v4338_v50 = vpop.f32.mrf.mxu1  ;;  %v1870_v6 = vsel %vm593_vm6, %v4090_v16, %v1869_v49  ;;  %v4430_v49 = vsel %vm596_vm7, %v1857_v63, %v1856_v5 }
 0x120   : > { %v4434_v52 = vsel %vm596_vm7, %v1871_v1, %v1870_v6  ;;  %v4448_v1 = vsel %vm593_vm6, %v2170_v26, %v2169_v25 }
 0x121   : > { %v3398_v51 = vpop.f32.mrf.mxu1  ;;  %3436 = vmatpush3.bf16.msra.mxu0 %v4177_v35  ;;  %3468 = vmatpush3.bf16.msra.mxu1 %v4177_v35 }
 0x122   : > { %3437 = vmatprep.subr.bf16.mxu0 %v3831_v24  ;;  %3469 = vmatprep.subr.bf16.mxu1 %v3831_v24  ;;  %v2154_v51 = vrot.slane %v4070_v7, 2 }
 0x124   : > { %v2155_v22 = vsel %vm590_vm5, %v2154_v51, %v2153_v56 }
 0x125   : > { %3438 = vmatpush3.bf16.msra.mxu0 %v4186_v37  ;;  %3470 = vmatpush3.bf16.msra.mxu1 %v4186_v37  ;;  %v4445_v63 = vsel %vm593_vm6, %v2156_v23, %v2155_v22 }
 0x126   : > { %3439 = vmatprep.subr.bf16.mxu0 %v3831_v24  ;;  %3471 = vmatprep.subr.bf16.mxu1 %v3831_v24 }
 0x129   : > { %3440 = vmatpush3.bf16.msra.mxu0 %v4197_v38  ;;  %3472 = vmatpush3.bf16.msra.mxu1 %v4197_v38 }
 0x12a   : > { %3441 = vmatprep.subr.bf16.mxu0 %v3831_v24  ;;  %3473 = vmatprep.subr.bf16.mxu1 %v3831_v24 }
 0x12d   : > { %3442 = vmatpush3.bf16.msra.mxu0 %v4206_v39  ;;  %3474 = vmatpush3.bf16.msra.mxu1 %v4206_v39 }
 0x12e   : > { %3443 = vmatprep.subr.bf16.mxu0 %v3831_v24  ;;  %3475 = vmatprep.subr.bf16.mxu1 %v3831_v24 }
 0x131   : > { %3444 = vmatpush3.bf16.msra.mxu0 %v4215_v40  ;;  %3476 = vmatpush3.bf16.msra.mxu1 %v4215_v40 }
 0x132   : > { %3445 = vmatprep.subr.bf16.mxu0 %v3831_v24  ;;  %3477 = vmatprep.subr.bf16.mxu1 %v3831_v24 }
 0x135   : > { %3446 = vmatpush3.bf16.msra.mxu0 %v4230_v43  ;;  %3478 = vmatpush3.bf16.msra.mxu1 %v4230_v43 }
 0x136   : > { %3483 = vmatprep.subr.bf16.mxu0 %v3831_v24  ;;  %3515 = vmatprep.subr.bf16.mxu1 %v3831_v24 }
 0x1c8   : > { %v750_v44 = vpop.f32.mrf.mxu0  ;;  %v1056_v45 = vpop.f32.mrf.mxu1 }
 0x1c9   : > { %v751_v54 = vadd.f32 %v750_v44, %v4316_v34  ;;  %v1057_v55 = vadd.f32 %v1056_v45, %v4328_v48  ;;  %v4412_v48 = vld [vmem:[%s4012_s12 + $0x14] sm:$0xf] }
 0x1ca   : > { %v3385_v59 = vpop.f32.mrf.mxu0  ;;  %v3417_v61 = vpop.f32.mrf.mxu1  ;;  %v3209_v47 = vcombine.low %v4412_v48, %v4415_v4  ;;  %v2173_v48 = vrot.slane %v4094_v18, 7 }
 0x1cb   : > { %v763_v2 = vadd.f32 %v4393_v36, %v751_v54  ;;  %v1063_v34 = vadd.f32 %v4393_v36, %v1057_v55 }
 0x1cc   : > { %v753_v20 = vpop.f32.mrf.mxu0  ;;  %v1059_v21 = vpop.f32.mrf.mxu1 }
 0x1cd   : > { %v765_v27 = vmax.f32 %v763_v2, 0.0  ;;  %v1065_v28 = vmax.f32 %v1063_v34, 0.0  ;;  %v754_v30 = vadd.f32 %v753_v20, %v4320_v46  ;;  %v1060_v31 = vadd.f32 %v1059_v21, %v4338_v50 }
 0x1ce   : > { %v3386_v44 = vpop.f32.mrf.mxu0  ;;  %v3418_v45 = vpop.f32.mrf.mxu1 }
 0x1cf   : > { %v769_v54 = vcombine.high %v765_v27, %v765_v27  ;;  %v776_v55 = vrot.slane %v765_v27, %v4403_v58  ;;  %v1069_v46 = vcombine.high %v1065_v28, %v1065_v28  ;;  %v1076_v50 = vrot.slane %v1065_v28, %v4403_v58 }
 0x1d0   : > { %v764_v56 = vadd.f32 %v4393_v36, %v754_v30  ;;  %v1064_v57 = vadd.f32 %v4393_v36, %v1060_v31  ;;  %v4440_v59 = vpop.f32.mrf.mxu0  ;;  %v4442_v61 = vpop.f32.mrf.mxu1 }
 0x1d1   : > { %v783_v2 = vrot.slane %v769_v54, %v4403_v58  ;;  %v784_v34 = vcombine.high %v776_v55, %v776_v55  ;;  %v792_v5 = vrot.slane %v776_v55, %v4403_v58  ;;  %3157 = vst.sshfl [vmem:[%s4453_s8] sm:$0x1 pattern:$0x73625140] %v776_v55  ;;  %v1083_v6 = vrot.slane %v1069_v46, %v4403_v58 }
 0x1d2   : > { %3168 = vst.sshfl [vmem:[%s4453_s8 + $0x1] sm:$0x1 pattern:$0x73625140] %v1076_v50  ;;  %v1084_v20 = vcombine.high %v1076_v50, %v1076_v50  ;;  %v1092_v21 = vrot.slane %v1076_v50, %v4403_v58  ;;  %v766_v22 = vmax.f32 %v764_v56, 0.0  ;;  %v1066_v23 = vmax.f32 %v1064_v57, 0.0  ;;  %v3423_v25 = vpop.f32.mrf.mxu0  ;;  %v3455_v26 = vpop.f32.mrf.mxu1 }
 0x1d3   : > { %v785_v27 = vcombine.high %v783_v2, %v783_v2  ;;  %v799_v28 = vrot.slane %v783_v2, %v4403_v58  ;;  %v806_v30 = vrot.slane %v784_v34, %v4403_v58  ;;  %v814_v31 = vcombine.high %v792_v5, %v792_v5  ;;  %3158 = vst.sshfl [vmem:[%s4453_s8 + $0x8] sm:$0x1 pattern:$0x73625140] %v784_v34 }
 0x1d4   : > { %3159 = vst.sshfl [vmem:[%s4453_s8 + $0x20] sm:$0x1 pattern:$0x73625140] %v783_v2  ;;  %v1085_v44 = vcombine.high %v1083_v6, %v1083_v6  ;;  %v1099_v45 = vrot.slane %v1083_v6, %v4403_v58  ;;  %v1106_v54 = vrot.slane %v1084_v20, %v4403_v58  ;;  %v1114_v55 = vcombine.high %v1092_v21, %v1092_v21  ;;  %v1244_v46 = vpop.f32.mrf.mxu0  ;;  %v1544_v50 = vpop.f32.mrf.mxu1 }
 0x1d5   : > { %3170 = vst.sshfl [vmem:[%s4453_s8 + $0x21] sm:$0x1 pattern:$0x73625140] %v1083_v6  ;;  %v813_v56 = vrot.slane %v785_v27, %v4403_v58  ;;  %v815_v57 = vcombine.high %v799_v28, %v799_v28  ;;  %v816_v5 = vcombine.high %v806_v30, %v806_v30  ;;  %885 = vst [vmem:[%s4453_s8 + $0x10] sm:$0x1] %v814_v31 }
 0x1d6   : > { %3169 = vst.sshfl [vmem:[%s4453_s8 + $0x9] sm:$0x1 pattern:$0x73625140] %v1084_v20  ;;  %v818_v2 = vcombine.high %v766_v22, %v766_v22  ;;  %v1113_v34 = vrot.slane %v1085_v44, %v4403_v58  ;;  %v1115_v6 = vcombine.high %v1099_v45, %v1099_v45  ;;  %v1116_v25 = vcombine.high %v1106_v54, %v1106_v54  ;;  %v3424_v21 = vpop.f32.mrf.mxu0  ;;  %v3456_v26 = vpop.f32.mrf.mxu1 }
 0x1d7   : > { %3160 = vst.sshfl [vmem:[%s4453_s8 + $0x28] sm:$0x1 pattern:$0x73625140] %v785_v27  ;;  %1185 = vst [vmem:[%s4453_s8 + $0x11] sm:$0x1] %v1114_v55  ;;  %v825_v20 = vrot.slane %v766_v22, %v4403_v58  ;;  %v817_v51 = vcombine.high %v813_v56, %v813_v56  ;;  %v1118_v28 = vcombine.high %v1066_v23, %v1066_v23 }
 0x1d8   : > { %3171 = vst.sshfl [vmem:[%s4453_s8 + $0x29] sm:$0x1 pattern:$0x73625140] %v1085_v44  ;;  %886 = vst [vmem:[%s4453_s8 + $0x18] sm:$0x1] %v816_v5  ;;  %v832_v27 = vrot.slane %v818_v2, %v4403_v58  ;;  %v1125_v30 = vrot.slane %v1066_v23, %v4403_v58  ;;  %v1117_v31 = vcombine.high %v1113_v34, %v1113_v34  ;;  %v4483_v54 = vpop.f32.mrf.mxu0  ;;  %v4485_v55 = vpop.f32.mrf.mxu1 }
 0x1d9   : > { %889 = vst [vmem:[%s4453_s8 + $0x30] sm:$0x1] %v815_v57  ;;  %1186 = vst [vmem:[%s4453_s8 + $0x19] sm:$0x1] %v1116_v25  ;;  %v833_v44 = vcombine.high %v825_v20, %v825_v20  ;;  %v841_v22 = vrot.slane %v825_v20, %v4403_v58  ;;  %v1248_v45 = vpack.c.bf16 %v1244_v46, %v4440_v59 }
 0x1da   : > { %1189 = vst [vmem:[%s4453_s8 + $0x31] sm:$0x1] %v1115_v6  ;;  %3161 = vst.sshfl [vmem:[%s4453_s8 + $0x40] sm:$0x1 pattern:$0x73625140] %v825_v20  ;;  %v834_v56 = vcombine.high %v832_v27, %v832_v27  ;;  %v848_v23 = vrot.slane %v832_v27, %v4403_v58  ;;  %v1132_v57 = vrot.slane %v1118_v28, %v4403_v58  ;;  %v3429_v34 = vpop.f32.mrf.mxu0  ;;  %v3461_v6 = vpop.f32.mrf.mxu1 }
 0x1db   : > { %890 = vst [vmem:[%s4453_s8 + $0x38] sm:$0x1] %v817_v51  ;;  %3163 = vst.sshfl [vmem:[%s4453_s8 + $0x60] sm:$0x1 pattern:$0x73625140] %v832_v27  ;;  %v1133_v5 = vcombine.high %v1125_v30, %v1125_v30  ;;  %v855_v2 = vrot.slane %v833_v44, %v4403_v58  ;;  %v863_v59 = vcombine.high %v841_v22, %v841_v22  ;;  %3448 = vmatmul.mubr.bf16.vlgmr.msra.gmra.mxu0 %v1248_v45 }
 0x1dc   : > { %3172 = vst.sshfl [vmem:[%s4453_s8 + $0x41] sm:$0x1 pattern:$0x73625140] %v1125_v30  ;;  %1190 = vst [vmem:[%s4453_s8 + $0x39] sm:$0x1] %v1117_v31  ;;  %v1141_v46 = vrot.slane %v1125_v30, %v4403_v58  ;;  %v1548_v51 = vpack.c.bf16 %v1544_v50, %v4442_v61  ;;  %v862_v25 = vrot.slane %v834_v56, %v4403_v58  ;;  %3484 = vmatpush3.bf16.msra.mxu0 %v3198_v62  ;;  %v4509_v28 = vpop.f32.mrf.mxu0  ;;  %v4511_v30 = vpop.f32.mrf.mxu1 }
 0x1dd   : > { %3162 = vst.sshfl [vmem:[%s4453_s8 + $0x48] sm:$0x1 pattern:$0x73625140] %v833_v44  ;;  %v864_v20 = vcombine.high %v848_v23, %v848_v23  ;;  %v1134_v21 = vcombine.high %v1132_v57, %v1132_v57  ;;  %v1148_v26 = vrot.slane %v1132_v57, %v4403_v58  ;;  %v865_v27 = vcombine.high %v855_v2, %v855_v2 }
 0x1de   : > { %3164 = vst.sshfl [vmem:[%s4453_s8 + $0x68] sm:$0x1 pattern:$0x73625140] %v834_v56  ;;  %893 = vst [vmem:[%s4453_s8 + $0x50] sm:$0x1] %v863_v59  ;;  %v1155_v61 = vrot.slane %v1133_v5, %v4403_v58  ;;  %v1163_v50 = vcombine.high %v1141_v46, %v1141_v46  ;;  %3480 = vmatmul.mubr.bf16.vlgmr.msra.gmra.mxu1 %v1548_v51  ;;  %3485 = vmatprep.mubr.msk.bf16.mxu0 %vm3832_vm0, %v3831_v24  ;;  %v3430_v22 = vpop.f32.mrf.mxu0  ;;  %v3462_v45 = vpop.f32.mrf.mxu1 }
 0x1df   : > { %3173 = vst.sshfl [vmem:[%s4453_s8 + $0x49] sm:$0x1 pattern:$0x73625140] %v1133_v5  ;;  %v1873_v31 = vrot.slane %v4094_v18, 6  ;;  %v866_v44 = vcombine.high %v862_v25, %v862_v25  ;;  %v1162_v32 = vrot.slane %v1134_v21, %v4403_v58  ;;  %v1164_v33 = vcombine.high %v1148_v26, %v1148_v26  ;;  %3516 = vmatpush3.bf16.msra.mxu1 %v3209_v47 }
 0x1e0   : > { %3174 = vst.sshfl [vmem:[%s4453_s8 + $0x61] sm:$0x1 pattern:$0x73625140] %v1132_v57  ;;  %897 = vst [vmem:[%s4453_s8 + $0x70] sm:$0x1] %v864_v20  ;;  %3517 = vmatprep.mubr.msk.bf16.mxu1 %vm3832_vm0, %v3831_v24  ;;  %v1165_v62 = vcombine.high %v1155_v61, %v1155_v61  ;;  %3489 = vmatprep.subr.bf16.mxu0 %v3831_v24  ;;  %v2158_v57 = vsel %vm596_vm7, %v4074_v9, %v4445_v63 }
 0x1e1   : > { %3175 = vst.sshfl [vmem:[%s4453_s8 + $0x69] sm:$0x1 pattern:$0x73625140] %v1134_v21  ;;  %894 = vst [vmem:[%s4453_s8 + $0x58] sm:$0x1] %v865_v27  ;;  %3521 = vmatprep.subr.bf16.mxu1 %v3831_v24  ;;  %v1166_v4 = vcombine.high %v1162_v32, %v1162_v32  ;;  %v2172_v5 = vsel %vm596_vm7, %v4092_v17, %v4448_v1  ;;  %v1874_v46 = vsel %vm599_vm8, %v1873_v31, %v4434_v52 }
 0x1e2   : > { %1193 = vst [vmem:[%s4453_s8 + $0x51] sm:$0x1] %v1163_v50  ;;  %v1861_v56 = vrot.slane %v4078_v11, 5  ;;  %v2159_v23 = vrot.slane %v4076_v10, 7  ;;  %898 = vst [vmem:[%s4453_s8 + $0x78] sm:$0x1] %v866_v44  ;;  %v2174_v1 = vsel %vm599_vm8, %v2173_v48, %v2172_v5 }
 0x1e3   : > { %1197 = vst [vmem:[%s4453_s8 + $0x71] sm:$0x1] %v1164_v33  ;;  %v1875_v47 = vrot.slane %v4096_v19, 5  ;;  %1194 = vst [vmem:[%s4453_s8 + $0x59] sm:$0x1] %v1165_v62  ;;  %v5064_v2 = vrot.slane %v4076_v10, 6  ;;  %3486 = vmatmul.mubr.msk.bf16.vlgmr.msra.gmra.mxu0 %vm505_vm2, %v4037_v41 }
 0x1e4   : > { %1198 = vst [vmem:[%s4453_s8 + $0x79] sm:$0x1] %v1166_v4  ;;  %v2161_v51 = vrot.slane %v4078_v11, 6  ;;  %v2175_v34 = vrot.slane %v4096_v19, 6  ;;  %v2160_v63 = vsel %vm599_vm8, %v2159_v23, %v2158_v57  ;;  %3490 = vmatpush3.bf16.msra.mxu0 %v4040_v42  ;;  %3491 = vmatprep.mubr.msk.bf16.mxu0 %vm3832_vm0, %v3831_v24  ;;  %v2750_v26 = vrot.slane %v4057_v60, 6 }
 0x1e5   : > { %v1860_v59 = vsel %vm599_vm8, %v5064_v2, %v4430_v49  ;;  %v1876_v52 = vsel %vm602_vm9, %v1875_v47, %v1874_v46  ;;  %3495 = vmatprep.subr.bf16.mxu0 %v3831_v24  ;;  %v4614_v27 = vld [vmem:[%s4012_s12 + $0x18] sm:$0xf]  ;;  %v2454_v61 = vrot.slane %v4070_v7, 3  ;;  %v4622_v44 = vld [vmem:[%s4012_s12 + $0x1c] sm:$0xf]  ;;  %v2752_v33 = vrot.slane %v4064_v3, 5 }
 0x1e6   : > { %v1862_v49 = vsel %vm602_vm9, %v1861_v56, %v1860_v59  ;;  %3518 = vmatmul.mubr.msk.bf16.vlgmr.msra.gmra.mxu1 %vm505_vm2, %v4037_v41  ;;  %v2162_v6 = vsel %vm602_vm9, %v2161_v51, %v2160_v63  ;;  %v2176_v25 = vsel %vm602_vm9, %v2175_v34, %v2174_v1  ;;  %v4619_v31 = vld [vmem:[%s4012_s12 + $0x38] sm:$0xf]  ;;  %v4627_v62 = vld [vmem:[%s4012_s12 + $0x3c] sm:$0xf]  ;;  %v2763_v22 = vrot.slane %v4082_v12, 7  ;;  %s3250_s12 = sshll.u32 %s3813_s26, 5 }
 0x1e7   : > { %3522 = vmatpush3.bf16.msra.mxu1 %v4040_v42  ;;  %3523 = vmatprep.mubr.msk.bf16.mxu1 %vm3832_vm0, %v3831_v24  ;;  %v1877_v20 = vpack.c.b16 %v1876_v52, %v1862_v49  ;;  %v2177_v21 = vpack.c.b16 %v2176_v25, %v2162_v6  ;;  %v2764_v45 = vrot.slane %v4084_v13, 6  ;;  %v2456_v23 = vrot.slane %v4072_v8, 2  ;;  %s4959_s26 = sadd.s32 %s3817_s27, %s3250_s12  ;;  %s3727_s12 = scalar_lea.vmem %s3726_s17, 4096 }
 0x1e8   : > { %3527 = vmatprep.subr.bf16.mxu1 %v3831_v24  ;;  %v2754_v57 = vrot.slane %v4070_v7, 4  ;;  %v2766_v46 = vrot.slane %v4086_v14, 5  ;;  %v2458_v52 = vrot.slane %v4074_v9, 1  ;;  %v2472_v6 = vrot.slane %v4092_v17, 1  ;;  %s3245_s27 = sshll.u32 %s4959_s26, 7  ;;  %p3729_p10 = scmp.lt.s32.totalorder %s3727_s12, %s3721_s13 }
 0x1e9   : > { %v2765_v63 = vsel %vm584_vm3, %v2764_v45, %v2763_v22  ;;  %v2756_v25 = vrot.slane %v4072_v8, 3  ;;  %s4983_s11 = scalar_lea.hbm %s5055_s6, %s3245_s27 }
 0x1ea   : > { %p3730_p11 = por %p3729_p10, %p3728_p9 }
 0x1eb   : > { %3492 = vmatmul.mubr.msk.bf16.vlgmr.msra.gmra.mxu0 %vm619_vm10, %v1877_v20 }
 0x1ec   : > { %3496 = vmatpush3.bf16.msra.mxu0 %v4143_v0  ;;  %3511 = vmatprep.mubr.msk.bf16.mxu0 %vm3832_vm0, %v3831_v24  ;;  %p3731_p12 = pnand %p3730_p11, %p3724_p7 }
 0x1ed   : > { %3497 = vmatprep.subr.bf16.mxu0 %v3831_v24 }
 0x1ee   : > { %3524 = vmatmul.mubr.msk.bf16.vlgmr.msra.gmra.mxu1 %vm619_vm10, %v2177_v21 }
 0x1ef   : > { %3528 = vmatpush3.bf16.msra.mxu1 %v4143_v0  ;;  %3543 = vmatprep.mubr.msk.bf16.mxu1 %vm3832_vm0, %v3831_v24  ;;  %v2449_v0 = vrot.slane %v4048_v53, 6 }
 0x1f0   : > { %3529 = vmatprep.subr.bf16.mxu1 %v3831_v24  ;;  %3498 = vmatpush3.bf16.msra.mxu0 %v4163_v29 }
 0x1f1   : > { %3499 = vmatprep.subr.bf16.mxu0 %v3831_v24 }
 0x1f3   : > { %3530 = vmatpush3.bf16.msra.mxu1 %v4163_v29  ;;  %v2450_v29 = vrot.slane %v4057_v60, 5 }
 0x1f4   : > { %3531 = vmatprep.subr.bf16.mxu1 %v3831_v24  ;;  %3500 = vmatpush3.bf16.msra.mxu0 %v4177_v35 }
 0x1f5   : > { %3501 = vmatprep.subr.bf16.mxu0 %v3831_v24 }
 0x1f7   : > { %3532 = vmatpush3.bf16.msra.mxu1 %v4177_v35  ;;  %v2463_v35 = vrot.slane %v4082_v12, 6  ;;  %v3231_v12 = vcombine.low %v4622_v44, %v4627_v62  ;;  %v2760_v44 = vrot.slane %v4076_v10, 1 }
 0x1f8   : > { %3533 = vmatprep.subr.bf16.mxu1 %v3831_v24  ;;  %3502 = vmatpush3.bf16.msra.mxu0 %v4186_v37 }
 0x1f9   : > { %3503 = vmatprep.subr.bf16.mxu0 %v3831_v24 }
 0x1fb   : > { %3534 = vmatpush3.bf16.msra.mxu1 %v4186_v37  ;;  %v2464_v37 = vrot.slane %v4084_v13, 5  ;;  %v2470_v13 = vrot.slane %v4090_v16, 2 }
 0x1fc   : > { %3535 = vmatprep.subr.bf16.mxu1 %v3831_v24  ;;  %3504 = vmatpush3.bf16.msra.mxu0 %v4197_v38 }
 0x1fd   : > { %3505 = vmatprep.subr.bf16.mxu0 %v3831_v24  ;;  %v2465_v50 = vsel %vm584_vm3, %v2464_v37, %v2463_v35  ;;  %v2758_v37 = vrot.slane %v4074_v9, 2 }
 0x1ff   : > { %3536 = vmatpush3.bf16.msra.mxu1 %v4197_v38  ;;  %v2452_v38 = vrot.slane %v4064_v3, 4  ;;  %v3220_v3 = vcombine.low %v4614_v27, %v4619_v31 }
 0x200   : > { %3537 = vmatprep.subr.bf16.mxu1 %v3831_v24  ;;  %3506 = vmatpush3.bf16.msra.mxu0 %v4206_v39 }
 0x201   : > { %3507 = vmatprep.subr.bf16.mxu0 %v3831_v24 }
 0x203   : > { %3538 = vmatpush3.bf16.msra.mxu1 %v4206_v39  ;;  %v2451_v39 = vsel %vm584_vm3, %v2450_v29, %v2449_v0 }
 0x204   : > { %3539 = vmatprep.subr.bf16.mxu1 %v3831_v24  ;;  %3508 = vmatpush3.bf16.msra.mxu0 %v4215_v40  ;;  %v2453_v32 = vsel %vm587_vm4, %v2452_v38, %v2451_v39  ;;  %v2767_v38 = vsel %vm587_vm4, %v2766_v46, %v2765_v63  ;;  %v2768_v39 = vrot.slane %v4088_v15, 4 }
 0x205   : > { %3509 = vmatprep.subr.bf16.mxu0 %v3831_v24  ;;  %v2455_v47 = vsel %vm590_vm5, %v2454_v61, %v2453_v32 }
 0x206   : > { %v4650_v49 = vsel %vm593_vm6, %v2456_v23, %v2455_v47  ;;  %v4682_v47 = vsel %vm590_vm5, %v2768_v39, %v2767_v38 }
 0x207   : > { %3540 = vmatpush3.bf16.msra.mxu1 %v4215_v40  ;;  %v2749_v40 = vrot.slane %v4048_v53, 7  ;;  %v2468_v53 = vrot.slane %v4088_v15, 3 }
 0x208   : > { %3541 = vmatprep.subr.bf16.mxu1 %v3831_v24  ;;  %3510 = vmatpush3.bf16.msra.mxu0 %v4230_v43 }
 0x209   : > { %3547 = vmatprep.subr.bf16.mxu0 %v3831_v24  ;;  %v2751_v60 = vsel %vm584_vm3, %v2750_v26, %v2749_v40 }
 0x20a   : > { %v2753_v59 = vsel %vm587_vm4, %v2752_v33, %v2751_v60  ;;  %v2770_v33 = vrot.slane %v4090_v16, 3 }
 0x20b   : > { %3542 = vmatpush3.bf16.msra.mxu1 %v4230_v43  ;;  %v2466_v43 = vrot.slane %v4086_v14, 4  ;;  %v2755_v21 = vsel %vm590_vm5, %v2754_v57, %v2753_v59 }
 0x20c   : > { %3579 = vmatprep.subr.bf16.mxu1 %v3831_v24  ;;  %v4670_v32 = vsel %vm593_vm6, %v2756_v25, %v2755_v21 }
 0x20d   : > { %v2467_v48 = vsel %vm587_vm4, %v2466_v43, %v2465_v50 }
 0x20e   : > { %v2469_v34 = vsel %vm590_vm5, %v2468_v53, %v2467_v48  ;;  %v2772_v53 = vrot.slane %v4092_v17, 2  ;;  %v2475_v17 = vrot.slane %v4096_v19, 7 }
 0x20f   : > { %v4659_v35 = vsel %vm593_vm6, %v2470_v13, %v2469_v34 }
 0x210   : > { %v2473_v16 = vsel %vm596_vm7, %v2472_v6, %v4659_v35  ;;  %v2461_v35 = vrot.slane %v4078_v11, 7 }
 0x29b   : > { %v1356_v56 = vpop.f32.mrf.mxu0 }
 0x29c   : > { %v1357_v4 = vadd.f32 %v1356_v56, %v4483_v54 }
 0x29d   : > { %v3449_v2 = vpop.f32.mrf.mxu0 }
 0x29e   : > { %v1656_v5 = vpop.f32.mrf.mxu1  ;;  %v1363_v54 = vadd.f32 %v4393_v36, %v1357_v4 }
 0x29f   : > { %v1657_v51 = vadd.f32 %v1656_v5, %v4485_v55  ;;  %v1359_v1 = vpop.f32.mrf.mxu0 }
 0x2a0   : > { %v3481_v7 = vpop.f32.mrf.mxu1  ;;  %v1365_v14 = vmax.f32 %v1363_v54, 0.0  ;;  %v1360_v55 = vadd.f32 %v1359_v1, %v4509_v28 }
 0x2a1   : > { %v1663_v20 = vadd.f32 %v4393_v36, %v1657_v51  ;;  %v3450_v29 = vpop.f32.mrf.mxu0 }
 0x2a2   : > { %v1659_v0 = vpop.f32.mrf.mxu1  ;;  %v1369_v8 = vcombine.high %v1365_v14, %v1365_v14  ;;  %v1376_v40 = vrot.slane %v1365_v14, %v4403_v58  ;;  %v1364_v28 = vadd.f32 %v4393_v36, %v1360_v55 }
 0x2a3   : > { %v1665_v26 = vmax.f32 %v1663_v20, 0.0  ;;  %v1660_v43 = vadd.f32 %v1659_v0, %v4511_v30  ;;  %v4667_v50 = vpop.f32.mrf.mxu0 }
 0x2a4   : > { %v3482_v61 = vpop.f32.mrf.mxu1  ;;  %v1383_v15 = vrot.slane %v1369_v8, %v4403_v58  ;;  %v1384_v60 = vcombine.high %v1376_v40, %v1376_v40  ;;  %v1392_v22 = vrot.slane %v1376_v40, %v4403_v58  ;;  %3179 = vst.sshfl [vmem:[%s4453_s8 + $0x2] sm:$0x1 pattern:$0x73625140] %v1376_v40  ;;  %v1366_v56 = vmax.f32 %v1364_v28, 0.0 }
 0x2a5   : > { %v1669_v45 = vcombine.high %v1665_v26, %v1665_v26  ;;  %v1676_v30 = vrot.slane %v1665_v26, %v4403_v58  ;;  %v1664_v23 = vadd.f32 %v4393_v36, %v1660_v43  ;;  %v3487_v4 = vpop.f32.mrf.mxu0 }
 0x2a6   : > { %v4679_v48 = vpop.f32.mrf.mxu1  ;;  %v1385_v57 = vcombine.high %v1383_v15, %v1383_v15  ;;  %v1399_v5 = vrot.slane %v1383_v15, %v4403_v58  ;;  %v1406_v2 = vrot.slane %v1384_v60, %v4403_v58  ;;  %v1414_v13 = vcombine.high %v1392_v22, %v1392_v22  ;;  %3180 = vst.sshfl [vmem:[%s4453_s8 + $0xa] sm:$0x1 pattern:$0x73625140] %v1384_v60 }
 0x2a7   : > { %3181 = vst.sshfl [vmem:[%s4453_s8 + $0x22] sm:$0x1 pattern:$0x73625140] %v1383_v15  ;;  %v1683_v59 = vrot.slane %v1669_v45, %v4403_v58  ;;  %v1684_v46 = vcombine.high %v1676_v30, %v1676_v30  ;;  %v1692_v54 = vrot.slane %v1676_v30, %v4403_v58  ;;  %v1418_v51 = vcombine.high %v1366_v56, %v1366_v56  ;;  %v1844_v63 = vpop.f32.mrf.mxu0 }
 0x2a8   : > { %3190 = vst.sshfl [vmem:[%s4453_s8 + $0x3] sm:$0x1 pattern:$0x73625140] %v1676_v30  ;;  %v3519_v34 = vpop.f32.mrf.mxu1  ;;  %v1413_v7 = vrot.slane %v1385_v57, %v4403_v58  ;;  %v1415_v1 = vcombine.high %v1399_v5, %v1399_v5  ;;  %v1416_v25 = vcombine.high %v1406_v2, %v1406_v2  ;;  %1485 = vst [vmem:[%s4453_s8 + $0x12] sm:$0x1] %v1414_v13 }
 0x2a9   : > { %3182 = vst.sshfl [vmem:[%s4453_s8 + $0x2a] sm:$0x1 pattern:$0x73625140] %v1385_v57  ;;  %v1425_v14 = vrot.slane %v1366_v56, %v4403_v58  ;;  %v1685_v20 = vcombine.high %v1683_v59, %v1683_v59  ;;  %v1699_v55 = vrot.slane %v1683_v59, %v4403_v58  ;;  %v1706_v21 = vrot.slane %v1684_v46, %v4403_v58  ;;  %v3488_v38 = vpop.f32.mrf.mxu0 }
 0x2aa   : > { %v1714_v0 = vcombine.high %v1692_v54, %v1692_v54  ;;  %3191 = vst.sshfl [vmem:[%s4453_s8 + $0xb] sm:$0x1 pattern:$0x73625140] %v1684_v46  ;;  %v2144_v29 = vpop.f32.mrf.mxu1  ;;  %v1417_v39 = vcombine.high %v1413_v7, %v1413_v7  ;;  %1486 = vst [vmem:[%s4453_s8 + $0x1a] sm:$0x1] %v1416_v25  ;;  %v1432_v8 = vrot.slane %v1418_v51, %v4403_v58 }
 0x2ab   : > { %3192 = vst.sshfl [vmem:[%s4453_s8 + $0x23] sm:$0x1 pattern:$0x73625140] %v1683_v59  ;;  %1489 = vst [vmem:[%s4453_s8 + $0x32] sm:$0x1] %v1415_v1  ;;  %v1433_v40 = vcombine.high %v1425_v14, %v1425_v14  ;;  %v1441_v26 = vrot.slane %v1425_v14, %v4403_v58  ;;  %v1713_v28 = vrot.slane %v1685_v20, %v4403_v58  ;;  %v4707_v22 = vpop.f32.mrf.mxu0 }
 0x2ac   : > { %3183 = vst.sshfl [vmem:[%s4453_s8 + $0x42] sm:$0x1 pattern:$0x73625140] %v1425_v14  ;;  %v1715_v43 = vcombine.high %v1699_v55, %v1699_v55  ;;  %v1716_v61 = vcombine.high %v1706_v21, %v1706_v21  ;;  %1785 = vst [vmem:[%s4453_s8 + $0x13] sm:$0x1] %v1714_v0  ;;  %v3520_v60 = vpop.f32.mrf.mxu1  ;;  %v1434_v45 = vcombine.high %v1432_v8, %v1432_v8 }
 0x2ad   : > { %3193 = vst.sshfl [vmem:[%s4453_s8 + $0x2b] sm:$0x1 pattern:$0x73625140] %v1685_v20  ;;  %v1666_v15 = vmax.f32 %v1664_v23, 0.0  ;;  %v1448_v30 = vrot.slane %v1432_v8, %v4403_v58  ;;  %v1455_v56 = vrot.slane %v1433_v40, %v4403_v58  ;;  %v1463_v4 = vcombine.high %v1441_v26, %v1441_v26  ;;  %v3493_v59 = vpop.f32.mrf.mxu0  ;;  %v3716_v26 = vld [vmem:[%s5052_s3 + $0x18] sm:$0xff]  }
 0x2ae   : > { %1490 = vst [vmem:[%s4453_s8 + $0x3a] sm:$0x1] %v1417_v39  ;;  %3184 = vst.sshfl [vmem:[%s4453_s8 + $0x4a] sm:$0x1 pattern:$0x73625140] %v1433_v40  ;;  %v1717_v57 = vcombine.high %v1713_v28, %v1713_v28  ;;  %v1848_v2 = vpack.c.bf16 %v1844_v63, %v4667_v50  ;;  %v4718_v13 = vpop.f32.mrf.mxu1  ;;  %v1462_v46 = vrot.slane %v1434_v45, %v4403_v58 }
 0x2af   : > { %3185 = vst.sshfl [vmem:[%s4453_s8 + $0x62] sm:$0x1 pattern:$0x73625140] %v1432_v8  ;;  %1786 = vst [vmem:[%s4453_s8 + $0x1b] sm:$0x1] %v1716_v61  ;;  %v1718_v23 = vcombine.high %v1666_v15, %v1666_v15  ;;  %v1725_v5 = vrot.slane %v1666_v15, %v4403_v58  ;;  %v1464_v54 = vcombine.high %v1448_v30, %v1448_v30  ;;  %v4728_v63 = vpop.f32.mrf.mxu0 }
 0x2b0   : > { %1789 = vst [vmem:[%s4453_s8 + $0x33] sm:$0x1] %v1715_v43  ;;  %v1465_v51 = vcombine.high %v1455_v56, %v1455_v56  ;;  %1493 = vst [vmem:[%s4453_s8 + $0x52] sm:$0x1] %v1463_v4  ;;  %v2148_v34 = vpack.c.bf16 %v2144_v29, %v4679_v48  ;;  %3512 = vmatmul.mubr.bf16.vlgmr.msra.gmra.mxu0 %v1848_v2  ;;  %v3525_v50 = vpop.f32.mrf.mxu1  ;;  %v2771_v14 = vsel %vm593_vm6, %v2770_v33, %v4682_v47  ;;  %v3715_v40 = vld [vmem:[%s5052_s3 + $0x20] sm:$0xff]   ;;  %v3717_v28 = vld [vmem:[%s5052_s3 + $0x10] sm:$0xff]  }
 0x2b1   : > { %3186 = vst.sshfl [vmem:[%s4453_s8 + $0x6a] sm:$0x1 pattern:$0x73625140] %v1434_v45  ;;  %1790 = vst [vmem:[%s4453_s8 + $0x3b] sm:$0x1] %v1717_v57  ;;  %v1732_v7 = vrot.slane %v1718_v23, %v4403_v58  ;;  %v1733_v1 = vcombine.high %v1725_v5, %v1725_v5  ;;  %v1741_v25 = vrot.slane %v1725_v5, %v4403_v58  ;;  %3548 = vmatpush3.bf16.msra.mxu0 %v3220_v3  ;;  %v3494_v31 = vpop.f32.mrf.mxu0 }
 0x2b2   : > { %3194 = vst.sshfl [vmem:[%s4453_s8 + $0x43] sm:$0x1 pattern:$0x73625140] %v1725_v5  ;;  %v1466_v20 = vcombine.high %v1462_v46, %v1462_v46  ;;  %1494 = vst [vmem:[%s4453_s8 + $0x5a] sm:$0x1] %v1465_v51  ;;  %3544 = vmatmul.mubr.bf16.vlgmr.msra.gmra.mxu1 %v2148_v34  ;;  %v2459_v48 = vsel %vm596_vm7, %v2458_v52, %v4650_v49  ;;  %v4754_v27 = vpop.f32.mrf.mxu1  ;;  %3549 = vmatprep.mubr.msk.bf16.mxu0 %vm3832_vm0, %v3831_v24 }
 0x2b3   : > { %1497 = vst [vmem:[%s4453_s8 + $0x72] sm:$0x1] %v1464_v54  ;;  %v1734_v33 = vcombine.high %v1732_v7, %v1732_v7  ;;  %v1748_v47 = vrot.slane %v1732_v7, %v4403_v58  ;;  %v1755_v55 = vrot.slane %v1733_v1, %v4403_v58  ;;  %v1763_v21 = vcombine.high %v1741_v25, %v1741_v25  ;;  %v3718_v43 = vld [vmem:[%s5052_s3 + $0x8] sm:$0xff]   ;;  %v3719_v61 = vld [vmem:[%s5052_s3] sm:$0xff]  }
 0x2b4   : > { %3195 = vst.sshfl [vmem:[%s4453_s8 + $0x4b] sm:$0x1 pattern:$0x73625140] %v1733_v1  ;;  %3580 = vmatpush3.bf16.msra.mxu1 %v3231_v12  ;;  %1498 = vst [vmem:[%s4453_s8 + $0x7a] sm:$0x1] %v1466_v20  ;;  %3581 = vmatprep.mubr.msk.bf16.mxu1 %vm3832_vm0, %v3831_v24  ;;  %v2759_v3 = vsel %vm596_vm7, %v2758_v37, %v4670_v32  ;;  %v2773_v62 = vsel %vm596_vm7, %v2772_v53, %v2771_v14  ;;  %v3526_v9 = vpop.f32.mrf.mxu1 }
 0x2b5   : > { %3196 = vst.sshfl [vmem:[%s4453_s8 + $0x63] sm:$0x1 pattern:$0x73625140] %v1732_v7  ;;  %v2774_v12 = vrot.slane %v4094_v18, 1  ;;  %v1762_v49 = vrot.slane %v1734_v33, %v4403_v58  ;;  %v1764_v52 = vcombine.high %v1748_v47, %v1748_v47  ;;  %v1765_v6 = vcombine.high %v1755_v55, %v1755_v55  ;;  %3553 = vmatprep.subr.bf16.mxu0 %v3831_v24 }
 0x2b6   : > { %1793 = vst [vmem:[%s4453_s8 + $0x53] sm:$0x1] %v1763_v21  ;;  %3197 = vst.sshfl [vmem:[%s4453_s8 + $0x6b] sm:$0x1 pattern:$0x73625140] %v1734_v33  ;;  %3585 = vmatprep.subr.bf16.mxu1 %v3831_v24  ;;  %v2460_v32 = vsel %vm599_vm8, %v4076_v10, %v2459_v48  ;;  %v2474_v53 = vsel %vm599_vm8, %v4094_v18, %v2473_v16  ;;  %v2761_v0 = vsel %vm599_vm8, %v2760_v44, %v2759_v3 }
 0x2b7   : > { %v1766_v37 = vcombine.high %v1762_v49, %v1762_v49  ;;  %1794 = vst [vmem:[%s4453_s8 + $0x5b] sm:$0x1] %v1765_v6  ;;  %1797 = vst [vmem:[%s4453_s8 + $0x73] sm:$0x1] %v1764_v52  ;;  %v2775_v29 = vsel %vm599_vm8, %v2774_v12, %v2773_v62  ;;  %v2462_v38 = vsel %vm602_vm9, %v2461_v35, %v2460_v32 }
 0x2b8   : > { %3550 = vmatmul.mubr.msk.bf16.vlgmr.msra.gmra.mxu0 %vm505_vm2, %v4037_v41  ;;  %v2476_v10 = vsel %vm602_vm9, %v2475_v17, %v2474_v53  ;;  %v2762_v18 = vsel %vm602_vm9, %v4078_v11, %v2761_v0  ;;  %v2776_v39 = vsel %vm602_vm9, %v4096_v19, %v2775_v29  ;;  %v3713_v11 = vld [vmem:[%s5052_s3 + $0x30] sm:$0xff]   ;;  %v3714_v19 = vld [vmem:[%s5052_s3 + $0x28] sm:$0xff]  }
 0x2b9   : > { %1798 = vst [vmem:[%s4453_s8 + $0x7b] sm:$0x1] %v1766_v37  ;;  %3554 = vmatpush3.bf16.msra.mxu0 %v4040_v42  ;;  %3555 = vmatprep.mubr.msk.bf16.mxu0 %vm3832_vm0, %v3831_v24  ;;  %v2777_v8 = vpack.c.b16 %v2776_v39, %v2762_v18 }
 0x2ba   : > { %3582 = vmatmul.mubr.msk.bf16.vlgmr.msra.gmra.mxu1 %vm505_vm2, %v4037_v41  ;;  %3559 = vmatprep.subr.bf16.mxu0 %v3831_v24  ;;  %v2477_v41 = vpack.c.b16 %v2476_v10, %v2462_v38 }
 0x2bb   : > { %3586 = vmatpush3.bf16.msra.mxu1 %v4040_v42  ;;  %3587 = vmatprep.mubr.msk.bf16.mxu1 %vm3832_vm0, %v3831_v24  ;;  %v3712_v42 = vld [vmem:[%s5052_s3 + $0x38] sm:$0xff]  }
 0x2bc   : > { %3591 = vmatprep.subr.bf16.mxu1 %v3831_v24 }
 0x2c0   : > { %3556 = vmatmul.mubr.msk.bf16.vlgmr.msra.gmra.mxu0 %vm619_vm10, %v2477_v41 }
 0x2c1   : > { %3560 = vmatpush3.bf16.msra.mxu0 %v3712_v42  ;;  %3575 = vmatprep.mubr.msk.bf16.mxu0 %vm3832_vm0, %v3831_v24 }
 0x2c2   : > { %3588 = vmatmul.mubr.msk.bf16.vlgmr.msra.gmra.mxu1 %vm619_vm10, %v2777_v8  ;;  %3561 = vmatprep.subr.bf16.mxu0 %v3831_v24 }
 0x2c3   : > { %3592 = vmatpush3.bf16.msra.mxu1 %v3712_v42  ;;  %3607 = vmatprep.mubr.msk.bf16.mxu1 %vm3832_vm0, %v3831_v24 }
 0x2c4   : > { %3593 = vmatprep.subr.bf16.mxu1 %v3831_v24 }
 0x2c5   : > { %3562 = vmatpush3.bf16.msra.mxu0 %v3713_v11 }
 0x2c6   : > { %3563 = vmatprep.subr.bf16.mxu0 %v3831_v24 }
 0x2c7   : > { %3594 = vmatpush3.bf16.msra.mxu1 %v3713_v11 }
 0x2c8   : > { %3595 = vmatprep.subr.bf16.mxu1 %v3831_v24 }
 0x2c9   : > { %3564 = vmatpush3.bf16.msra.mxu0 %v3714_v19 }
 0x2ca   : > { %3565 = vmatprep.subr.bf16.mxu0 %v3831_v24 }
 0x2cb   : > { %3596 = vmatpush3.bf16.msra.mxu1 %v3714_v19 }
 0x2cc   : > { %3597 = vmatprep.subr.bf16.mxu1 %v3831_v24 }
 0x2cd   : > { %3566 = vmatpush3.bf16.msra.mxu0 %v3715_v40 }
 0x2ce   : > { %3567 = vmatprep.subr.bf16.mxu0 %v3831_v24 }
 0x2cf   : > { %3598 = vmatpush3.bf16.msra.mxu1 %v3715_v40 }
 0x2d0   : > { %3599 = vmatprep.subr.bf16.mxu1 %v3831_v24 }
 0x2d1   : > { %3568 = vmatpush3.bf16.msra.mxu0 %v3716_v26 }
 0x2d2   : > { %3569 = vmatprep.subr.bf16.mxu0 %v3831_v24 }
 0x2d3   : > { %3600 = vmatpush3.bf16.msra.mxu1 %v3716_v26 }
 0x2d4   : > { %3601 = vmatprep.subr.bf16.mxu1 %v3831_v24 }
 0x2d5   : > { %3570 = vmatpush3.bf16.msra.mxu0 %v3717_v28 }
 0x2d6   : > { %3571 = vmatprep.subr.bf16.mxu0 %v3831_v24 }
 0x2d7   : > { %3602 = vmatpush3.bf16.msra.mxu1 %v3717_v28 }
 0x2d8   : > { %3603 = vmatprep.subr.bf16.mxu1 %v3831_v24 }
 0x2d9   : > { %3572 = vmatpush3.bf16.msra.mxu0 %v3718_v43 }
 0x2da   : > { %3573 = vmatprep.subr.bf16.mxu0 %v3831_v24 }
 0x2db   : > { %3604 = vmatpush3.bf16.msra.mxu1 %v3718_v43 }
 0x2dc   : > { %3605 = vmatprep.subr.bf16.mxu1 %v3831_v24 }
 0x2dd   : > { %3574 = vmatpush3.bf16.msra.mxu0 %v3719_v61 }
 0x2df   : > { %3606 = vmatpush3.bf16.msra.mxu1 %v3719_v61 }
 0x370   : > { %v1956_v15 = vpop.f32.mrf.mxu0 }
 0x371   : > { %v1957_v60 = vadd.f32 %v1956_v15, %v4707_v22 }
 0x372   : > { %v2256_v45 = vpop.f32.mrf.mxu1  ;;  %v3513_v56 = vpop.f32.mrf.mxu0 }
 0x373   : > { %v2257_v30 = vadd.f32 %v2256_v45, %v4718_v13  ;;  %v1963_v4 = vadd.f32 %v4393_v36, %v1957_v60 }
 0x374   : > { %v3545_v57 = vpop.f32.mrf.mxu1  ;;  %v1959_v5 = vpop.f32.mrf.mxu0 }
 0x375   : > { %v2263_v23 = vadd.f32 %v4393_v36, %v2257_v30  ;;  %v1965_v24 = vmax.f32 %v1963_v4, 0.0  ;;  %v1960_v2 = vadd.f32 %v1959_v5, %v4728_v63 }
 0x376   : > { %v2259_v59 = vpop.f32.mrf.mxu1  ;;  %v3514_v51 = vpop.f32.mrf.mxu0 }
 0x377   : > { %v2265_v46 = vmax.f32 %v2263_v23, 0.0  ;;  %v2260_v54 = vadd.f32 %v2259_v59, %v4754_v27  ;;  %v1969_v22 = vcombine.high %v1965_v24, %v1965_v24  ;;  %v1976_v34 = vrot.slane %v1965_v24, %v4403_v58 }
 0x378   : > { %v1964_v13 = vadd.f32 %v4393_v36, %v1960_v2  ;;  %v3546_v7 = vpop.f32.mrf.mxu1  ;;  %v4858_v14 = vpop.f32.mrf.mxu0 }
 0x379   : > { %v2269_v1 = vcombine.high %v2265_v46, %v2265_v46  ;;  %v2276_v25 = vrot.slane %v2265_v46, %v4403_v58  ;;  %v2264_v50 = vadd.f32 %v4393_v36, %v2260_v54  ;;  %v1983_v63 = vrot.slane %v1969_v22, %v4403_v58  ;;  %3201 = vst.sshfl [vmem:[%s4453_s8 + $0x4] sm:$0x1 pattern:$0x73625140] %v1976_v34 }
 0x37a   : > { %v1984_v20 = vcombine.high %v1976_v34, %v1976_v34  ;;  %v1992_v48 = vrot.slane %v1976_v34, %v4403_v58  ;;  %v1966_v16 = vmax.f32 %v1964_v13, 0.0  ;;  %v4863_v33 = vpop.f32.mrf.mxu1  ;;  %v3551_v27 = vpop.f32.mrf.mxu0 }
 0x37b   : > { %v2283_v47 = vrot.slane %v2269_v1, %v4403_v58  ;;  %v2284_v55 = vcombine.high %v2276_v25, %v2276_v25  ;;  %v2292_v21 = vrot.slane %v2276_v25, %v4403_v58  ;;  %3212 = vst.sshfl [vmem:[%s4453_s8 + $0x5] sm:$0x1 pattern:$0x73625140] %v2276_v25  ;;  %v2266_v36 = vmax.f32 %v2264_v50, 0.0 }
 0x37c   : > { %v1985_v31 = vcombine.high %v1983_v63, %v1983_v63  ;;  %v1999_v3 = vrot.slane %v1983_v63, %v4403_v58  ;;  %v2006_v44 = vrot.slane %v1984_v20, %v4403_v58  ;;  %v2014_v62 = vcombine.high %v1992_v48, %v1992_v48  ;;  %3202 = vst.sshfl [vmem:[%s4453_s8 + $0xc] sm:$0x1 pattern:$0x73625140] %v1984_v20  ;;  %v3583_v12 = vpop.f32.mrf.mxu1  ;;  %v2444_v35 = vpop.f32.mrf.mxu0 }
 0x37d   : > { %3203 = vst.sshfl [vmem:[%s4453_s8 + $0x24] sm:$0x1 pattern:$0x73625140] %v1983_v63  ;;  %v2285_v49 = vcombine.high %v2283_v47, %v2283_v47  ;;  %v2299_v52 = vrot.slane %v2283_v47, %v4403_v58  ;;  %v2306_v6 = vrot.slane %v2284_v55, %v4403_v58  ;;  %v2314_v9 = vcombine.high %v2292_v21, %v2292_v21 }
 0x37e   : > { %3213 = vst.sshfl [vmem:[%s4453_s8 + $0xd] sm:$0x1 pattern:$0x73625140] %v2284_v55  ;;  %v2013_v17 = vrot.slane %v1985_v31, %v4403_v58  ;;  %v2015_v37 = vcombine.high %v1999_v3, %v1999_v3  ;;  %v2016_v32 = vcombine.high %v2006_v44, %v2006_v44  ;;  %2085 = vst [vmem:[%s4453_s8 + $0x14] sm:$0x1] %v2014_v62  ;;  %v2744_v0 = vpop.f32.mrf.mxu1  ;;  %v3552_v39 = vpop.f32.mrf.mxu0 }
 0x37f   : > { %3214 = vst.sshfl [vmem:[%s4453_s8 + $0x25] sm:$0x1 pattern:$0x73625140] %v2283_v47  ;;  %v2018_v53 = vcombine.high %v1966_v16, %v1966_v16  ;;  %v2313_v29 = vrot.slane %v2285_v49, %v4403_v58  ;;  %v2315_v38 = vcombine.high %v2299_v52, %v2299_v52  ;;  %v2316_v10 = vcombine.high %v2306_v6, %v2306_v6 }
 0x380   : > { %3204 = vst.sshfl [vmem:[%s4453_s8 + $0x2c] sm:$0x1 pattern:$0x73625140] %v1985_v31  ;;  %2385 = vst [vmem:[%s4453_s8 + $0x15] sm:$0x1] %v2314_v9  ;;  %v2025_v18 = vrot.slane %v1966_v16, %v4403_v58  ;;  %v2017_v41 = vcombine.high %v2013_v17, %v2013_v17  ;;  %v2318_v42 = vcombine.high %v2266_v36, %v2266_v36  ;;  %v3584_v19 = vpop.f32.mrf.mxu1  ;;  %v2515_v61 = vpop.f32.mrf.mxu0 }
 0x381   : > { %3215 = vst.sshfl [vmem:[%s4453_s8 + $0x2d] sm:$0x1 pattern:$0x73625140] %v2285_v49  ;;  %2086 = vst [vmem:[%s4453_s8 + $0x1c] sm:$0x1] %v2016_v32  ;;  %v2032_v8 = vrot.slane %v2018_v53, %v4403_v58  ;;  %v2325_v11 = vrot.slane %v2266_v36, %v4403_v58  ;;  %v2317_v40 = vcombine.high %v2313_v29, %v2313_v29 }
 0x382   : > { %2089 = vst [vmem:[%s4453_s8 + $0x34] sm:$0x1] %v2015_v37  ;;  %2386 = vst [vmem:[%s4453_s8 + $0x1d] sm:$0x1] %v2316_v10  ;;  %v2033_v26 = vcombine.high %v2025_v18, %v2025_v18  ;;  %v2041_v28 = vrot.slane %v2025_v18, %v4403_v58  ;;  %v2448_v43 = vpack.c.bf16 %v2444_v35, %v4858_v14  ;;  %v2815_v56 = vpop.f32.mrf.mxu1  ;;  %v3557_v24 = vpop.f32.mrf.mxu0  ;;  %v3720_v36 = vld [vmem:[%s5054_s5] ss:$0 sm:$0xff] }
 0x383   : > { %2389 = vst [vmem:[%s4453_s8 + $0x35] sm:$0x1] %v2315_v38  ;;  %3205 = vst.sshfl [vmem:[%s4453_s8 + $0x44] sm:$0x1 pattern:$0x73625140] %v2025_v18  ;;  %v2034_v15 = vcombine.high %v2032_v8, %v2032_v8  ;;  %v2048_v60 = vrot.slane %v2032_v8, %v4403_v58  ;;  %v2332_v45 = vrot.slane %v2318_v42, %v4403_v58 }
 0x384   : > { %2090 = vst [vmem:[%s4453_s8 + $0x3c] sm:$0x1] %v2017_v41  ;;  %3207 = vst.sshfl [vmem:[%s4453_s8 + $0x64] sm:$0x1 pattern:$0x73625140] %v2032_v8  ;;  %v2333_v30 = vcombine.high %v2325_v11, %v2325_v11  ;;  %v2055_v4 = vrot.slane %v2033_v26, %v4403_v58  ;;  %v2063_v57 = vcombine.high %v2041_v28, %v2041_v28  ;;  %3576 = vmatmul.mubr.bf16.vlgmr.msra.gmra.mxu0 %v2448_v43  ;;  %v3589_v51 = vpop.f32.mrf.mxu1  ;;  %v2518_v7 = vpop.f32.mrf.mxu0 }
 0x385   : > { %3216 = vst.sshfl [vmem:[%s4453_s8 + $0x45] sm:$0x1 pattern:$0x73625140] %v2325_v11  ;;  %2390 = vst [vmem:[%s4453_s8 + $0x3d] sm:$0x1] %v2317_v40  ;;  %v2341_v23 = vrot.slane %v2325_v11, %v4403_v58  ;;  %v2748_v5 = vpack.c.bf16 %v2744_v0, %v4863_v33  ;;  %v2062_v2 = vrot.slane %v2034_v15, %v4403_v58 }
 0x386   : > { %3206 = vst.sshfl [vmem:[%s4453_s8 + $0x4c] sm:$0x1 pattern:$0x73625140] %v2033_v26  ;;  %v2064_v59 = vcombine.high %v2048_v60, %v2048_v60  ;;  %v2334_v46 = vcombine.high %v2332_v45, %v2332_v45  ;;  %v2348_v54 = vrot.slane %v2332_v45, %v4403_v58  ;;  %v2065_v22 = vcombine.high %v2055_v4, %v2055_v4  ;;  %v2818_v14 = vpop.f32.mrf.mxu1  ;;  %v3558_v20 = vpop.f32.mrf.mxu0 }
 0x387   : > { %3208 = vst.sshfl [vmem:[%s4453_s8 + $0x6c] sm:$0x1 pattern:$0x73625140] %v2034_v15  ;;  %2093 = vst [vmem:[%s4453_s8 + $0x54] sm:$0x1] %v2063_v57  ;;  %v2355_v34 = vrot.slane %v2333_v30, %v4403_v58  ;;  %v2363_v13 = vcombine.high %v2341_v23, %v2341_v23  ;;  %3608 = vmatmul.mubr.bf16.vlgmr.msra.gmra.mxu1 %v2748_v5  ;;  %v2066_v1 = vcombine.high %v2062_v2, %v2062_v2 }
 0x388   : > { %3217 = vst.sshfl [vmem:[%s4453_s8 + $0x4d] sm:$0x1 pattern:$0x73625140] %v2333_v30  ;;  %2097 = vst [vmem:[%s4453_s8 + $0x74] sm:$0x1] %v2064_v59  ;;  %v2362_v25 = vrot.slane %v2334_v46, %v4403_v58  ;;  %v2364_v50 = vcombine.high %v2348_v54, %v2348_v54  ;;  %v3590_v16 = vpop.f32.mrf.mxu1 }
 0x389   : > { %3218 = vst.sshfl [vmem:[%s4453_s8 + $0x65] sm:$0x1 pattern:$0x73625140] %v2332_v45  ;;  %2094 = vst [vmem:[%s4453_s8 + $0x5c] sm:$0x1] %v2065_v22  ;;  %v2365_v63 = vcombine.high %v2355_v34, %v2355_v34 }
 0x38a   : > { %3219 = vst.sshfl [vmem:[%s4453_s8 + $0x6d] sm:$0x1 pattern:$0x73625140] %v2334_v46  ;;  %2393 = vst [vmem:[%s4453_s8 + $0x55] sm:$0x1] %v2363_v13  ;;  %v2366_v48 = vcombine.high %v2362_v25, %v2362_v25 }
 0x38b   : > { %2098 = vst [vmem:[%s4453_s8 + $0x7c] sm:$0x1] %v2066_v1  ;;  %2397 = vst [vmem:[%s4453_s8 + $0x75] sm:$0x1] %v2364_v50 }
 0x38c   : > { %2394 = vst [vmem:[%s4453_s8 + $0x5d] sm:$0x1] %v2365_v63  ;;  %2398 = vst [vmem:[%s4453_s8 + $0x7d] sm:$0x1] %v2366_v48 }
 0x444   : > { %v2556_v33 = vpop.f32.mrf.mxu0 }
 0x445   : > { %v2557_v47 = vadd.f32 %v2556_v33, %v2515_v61 }
 0x446   : > { %v3577_v21 = vpop.f32.mrf.mxu0 }
 0x447   : > { %v2856_v55 = vpop.f32.mrf.mxu1  ;;  %v2563_v27 = vadd.f32 %v3720_v36, %v2557_v47 }
 0x448   : > { %v2857_v31 = vadd.f32 %v2856_v55, %v2815_v56  ;;  %v2559_v44 = vpop.f32.mrf.mxu0 }
 0x449   : > { %v3609_v3 = vpop.f32.mrf.mxu1  ;;  %v2565_v62 = vmax.f32 %v2563_v27, 0.0  ;;  %v2560_v49 = vadd.f32 %v2559_v44, %v2518_v7 }
 0x44a   : > { %v2863_v12 = vadd.f32 %v3720_v36, %v2857_v31  ;;  %v3578_v6 = vpop.f32.mrf.mxu0 }
 0x44b   : > { %v2859_v52 = vpop.f32.mrf.mxu1  ;;  %v2569_v9 = vcombine.high %v2565_v62, %v2565_v62  ;;  %v2576_v35 = vrot.slane %v2565_v62, %v4403_v58  ;;  %v2564_v37 = vadd.f32 %v3720_v36, %v2560_v49 }
 0x44c   : > { %v2865_v17 = vmax.f32 %v2863_v12, 0.0  ;;  %v2860_v32 = vadd.f32 %v2859_v52, %v2818_v14 }
 0x44d   : > { %v3610_v53 = vpop.f32.mrf.mxu1  ;;  %v2583_v0 = vrot.slane %v2569_v9, %v4403_v58  ;;  %v2584_v29 = vcombine.high %v2576_v35, %v2576_v35  ;;  %v2592_v38 = vrot.slane %v2576_v35, %v4403_v58  ;;  %3223 = vst.sshfl [vmem:[%s4453_s8 + $0x6] sm:$0x1 pattern:$0x73625140] %v2576_v35  ;;  %v2566_v39 = vmax.f32 %v2564_v37, 0.0 }
 0x44e   : > { %v2869_v10 = vcombine.high %v2865_v17, %v2865_v17  ;;  %v2876_v18 = vrot.slane %v2865_v17, %v4403_v58  ;;  %v2864_v41 = vadd.f32 %v3720_v36, %v2860_v32 }
 0x44f   : > { %v2585_v8 = vcombine.high %v2583_v0, %v2583_v0  ;;  %v2599_v42 = vrot.slane %v2583_v0, %v4403_v58  ;;  %v2606_v11 = vrot.slane %v2584_v29, %v4403_v58  ;;  %v2614_v19 = vcombine.high %v2592_v38, %v2592_v38  ;;  %3224 = vst.sshfl [vmem:[%s4453_s8 + $0xe] sm:$0x1 pattern:$0x73625140] %v2584_v29 }
 0x450   : > { %3225 = vst.sshfl [vmem:[%s4453_s8 + $0x26] sm:$0x1 pattern:$0x73625140] %v2583_v0  ;;  %v2883_v40 = vrot.slane %v2869_v10, %v4403_v58  ;;  %v2884_v26 = vcombine.high %v2876_v18, %v2876_v18  ;;  %v2892_v28 = vrot.slane %v2876_v18, %v4403_v58  ;;  %v2618_v43 = vcombine.high %v2566_v39, %v2566_v39 }
 0x451   : > { %3234 = vst.sshfl [vmem:[%s4453_s8 + $0x7] sm:$0x1 pattern:$0x73625140] %v2876_v18  ;;  %v2613_v61 = vrot.slane %v2585_v8, %v4403_v58  ;;  %v2615_v15 = vcombine.high %v2599_v42, %v2599_v42  ;;  %v2616_v60 = vcombine.high %v2606_v11, %v2606_v11  ;;  %2685 = vst [vmem:[%s4453_s8 + $0x16] sm:$0x1] %v2614_v19 }
 0x452   : > { %3226 = vst.sshfl [vmem:[%s4453_s8 + $0x2e] sm:$0x1 pattern:$0x73625140] %v2585_v8  ;;  %v2625_v45 = vrot.slane %v2566_v39, %v4403_v58  ;;  %v2885_v30 = vcombine.high %v2883_v40, %v2883_v40  ;;  %v2899_v56 = vrot.slane %v2883_v40, %v4403_v58  ;;  %v2906_v4 = vrot.slane %v2884_v26, %v4403_v58 }
 0x453   : > { %v2914_v57 = vcombine.high %v2892_v28, %v2892_v28  ;;  %3235 = vst.sshfl [vmem:[%s4453_s8 + $0xf] sm:$0x1 pattern:$0x73625140] %v2884_v26  ;;  %v2617_v23 = vcombine.high %v2613_v61, %v2613_v61  ;;  %2686 = vst [vmem:[%s4453_s8 + $0x1e] sm:$0x1] %v2616_v60  ;;  %v2632_v5 = vrot.slane %v2618_v43, %v4403_v58 }
 0x454   : > { %3236 = vst.sshfl [vmem:[%s4453_s8 + $0x27] sm:$0x1 pattern:$0x73625140] %v2883_v40  ;;  %2689 = vst [vmem:[%s4453_s8 + $0x36] sm:$0x1] %v2615_v15  ;;  %v2633_v24 = vcombine.high %v2625_v45, %v2625_v45  ;;  %v2641_v2 = vrot.slane %v2625_v45, %v4403_v58  ;;  %v2913_v59 = vrot.slane %v2885_v30, %v4403_v58 }
 0x455   : > { %3227 = vst.sshfl [vmem:[%s4453_s8 + $0x46] sm:$0x1 pattern:$0x73625140] %v2625_v45  ;;  %v2915_v46 = vcombine.high %v2899_v56, %v2899_v56  ;;  %v2916_v54 = vcombine.high %v2906_v4, %v2906_v4  ;;  %2985 = vst [vmem:[%s4453_s8 + $0x17] sm:$0x1] %v2914_v57  ;;  %v2634_v22 = vcombine.high %v2632_v5, %v2632_v5 }
 0x456   : > { %3237 = vst.sshfl [vmem:[%s4453_s8 + $0x2f] sm:$0x1 pattern:$0x73625140] %v2885_v30  ;;  %v2866_v51 = vmax.f32 %v2864_v41, 0.0  ;;  %v2648_v34 = vrot.slane %v2632_v5, %v4403_v58  ;;  %v2655_v13 = vrot.slane %v2633_v24, %v4403_v58  ;;  %v2663_v7 = vcombine.high %v2641_v2, %v2641_v2 }
 0x457   : > { %2690 = vst [vmem:[%s4453_s8 + $0x3e] sm:$0x1] %v2617_v23  ;;  %3228 = vst.sshfl [vmem:[%s4453_s8 + $0x4e] sm:$0x1 pattern:$0x73625140] %v2633_v24  ;;  %v2917_v1 = vcombine.high %v2913_v59, %v2913_v59  ;;  %v2662_v14 = vrot.slane %v2634_v22, %v4403_v58 }
 0x458   : > { %3229 = vst.sshfl [vmem:[%s4453_s8 + $0x66] sm:$0x1 pattern:$0x73625140] %v2632_v5  ;;  %2986 = vst [vmem:[%s4453_s8 + $0x1f] sm:$0x1] %v2916_v54  ;;  %v2918_v25 = vcombine.high %v2866_v51, %v2866_v51  ;;  %v2925_v50 = vrot.slane %v2866_v51, %v4403_v58  ;;  %v2664_v63 = vcombine.high %v2648_v34, %v2648_v34 }
 0x459   : > { %2989 = vst [vmem:[%s4453_s8 + $0x37] sm:$0x1] %v2915_v46  ;;  %v2665_v20 = vcombine.high %v2655_v13, %v2655_v13  ;;  %2693 = vst [vmem:[%s4453_s8 + $0x56] sm:$0x1] %v2663_v7  ;;  %v2666_v47 = vcombine.high %v2662_v14, %v2662_v14 }
 0x45a   : > { %3230 = vst.sshfl [vmem:[%s4453_s8 + $0x6e] sm:$0x1 pattern:$0x73625140] %v2634_v22  ;;  %2990 = vst [vmem:[%s4453_s8 + $0x3f] sm:$0x1] %v2917_v1  ;;  %v2932_v48 = vrot.slane %v2918_v25, %v4403_v58  ;;  %v2933_v16 = vcombine.high %v2925_v50, %v2925_v50  ;;  %v2941_v33 = vrot.slane %v2925_v50, %v4403_v58 }
 0x45b   : > { %3238 = vst.sshfl [vmem:[%s4453_s8 + $0x47] sm:$0x1 pattern:$0x73625140] %v2925_v50  ;;  %2694 = vst [vmem:[%s4453_s8 + $0x5e] sm:$0x1] %v2665_v20 }
 0x45c   : > { %2697 = vst [vmem:[%s4453_s8 + $0x76] sm:$0x1] %v2664_v63  ;;  %v2934_v55 = vcombine.high %v2932_v48, %v2932_v48  ;;  %v2948_v21 = vrot.slane %v2932_v48, %v4403_v58  ;;  %v2955_v36 = vrot.slane %v2933_v16, %v4403_v58  ;;  %v2963_v27 = vcombine.high %v2941_v33, %v2941_v33 }
 0x45d   : > { %3239 = vst.sshfl [vmem:[%s4453_s8 + $0x4f] sm:$0x1 pattern:$0x73625140] %v2933_v16  ;;  %2698 = vst [vmem:[%s4453_s8 + $0x7e] sm:$0x1] %v2666_v47 }
 0x45e   : > { %3240 = vst.sshfl [vmem:[%s4453_s8 + $0x67] sm:$0x1 pattern:$0x73625140] %v2932_v48  ;;  %v2962_v31 = vrot.slane %v2934_v55, %v4403_v58  ;;  %v2964_v3 = vcombine.high %v2948_v21, %v2948_v21  ;;  %v2965_v44 = vcombine.high %v2955_v36, %v2955_v36  ;;  %2993 = vst [vmem:[%s4453_s8 + $0x57] sm:$0x1] %v2963_v27 }
 0x45f   : > { %3241 = vst.sshfl [vmem:[%s4453_s8 + $0x6f] sm:$0x1 pattern:$0x73625140] %v2934_v55 }
 0x460   : > { %v2966_v62 = vcombine.high %v2962_v31, %v2962_v31  ;;  %2994 = vst [vmem:[%s4453_s8 + $0x5f] sm:$0x1] %v2965_v44  ;;  %2997 = vst [vmem:[%s4453_s8 + $0x77] sm:$0x1] %v2964_v3 }
 0x462   : > { %2998 = vst [vmem:[%s4453_s8 + $0x7f] sm:$0x1] %v2966_v62 }
 0x463   : > { %3734 = shalt.err (!%p3731_p12)
}
 0x464   : > { %s3735_s10 = scalar_lea.hbm %s4983_s11, 2048  ;;  %s3739_s27 = scalar_lea.hbm %s5055_s6, 8192 }
 0x465   : > { %p3736_p0 = scmp.ne.s32.totalorder %s4983_s11, %s3735_s10  ;;  %p3740_p3 = scmp.lt.s32.totalorder %s4983_s11, %s5055_s6 }
 0x466   : > { %p3741_p4 = scmp.lt.s32.totalorder %s3739_s27, %s3735_s10 }
 0x467   : > { %p3737_p1 = pnand %p3736_p0, %p3949_p8 }
 0x468   : > { %p3742_p5 = por %p3741_p4, %p3740_p3 }
 0x469   : > { %p3738_p2 = pneg %p3737_p1 }
 0x46b   : > { %p3743_p6 = pnand %p3742_p5, %p3738_p2 }
 0x46d   : > { %3746 = shalt.err (!%p3743_p6)
}
 0x46e   : > { %s3835_s13 = smov 128   ;;  %s3836_s15 = smov 256  }
 0x46f   : > { %s3837_s17 = smov 8  }
 0x470   : > { %3611 = dma.vmem_to_hbm [thread:$0]  (%p3949_p8), %s4985_s22, 2048, %s4983_s11, %s4992_s9, %s3835_s13, %s3836_s15, %s3837_s17  }
 0x471 PF: > { %p3617_p7 = scmp.ge.s32.totalorder %s3829_s30, 2  ;;  %s3030_s12 = sand.u32 1, %s3793_s21  }
 0x472   : > { %s3031_s10 = scalar_lea.sflag [#allocation5], %s3030_s12 }
 0x473   : > { %p3614_p9 = pnand %p3617_p7, %p3963_p13 }
 0x475   : > { %p3615_p10 = pneg %p3614_p9 }
 0x477   : > { %3788 = dma.done.wait (%p3615_p10), %s3031_s10, 2048  }
 0x478   : > { %3790 = vsyncadd (%p3615_p10), %s3031_s10, 4294965248  ;;  %s19_s30 = sadd.s32 1, %s3829_s30   ;;  %s5065_s16 = sld [smem:[#allocation7_spill]] }
 0x479   : > { %p16_p11 = scmp.ge.s32.totalorder %s19_s30, 6   ;;  %s5066_s11 = sld [smem:[#allocation8_spill]] }
 0x47a   : > { %s5067_s21 = smov %s3805_s24  ;;  %s5068_s22 = smov %s3801_s23 }
 0x47b   : > { %s5069_s23 = smov %s3958_s19  ;;  %s5070_s24 = smov %s3809_s25 }
 0x47c   : > { %s5071_s25 = smov %s3961_s20  ;;  %s5072_s26 = smov %s3821_s28 }
 0x47d   : > { %s5073_s27 = smov %s3825_s29  ;;  %18 = sbr.rel (!%p16_p11) target bundleno = 6 (0x6), region = 156 }
 0x47e   : > { %s5074_s28 = smov %s5065_s16 }
 0x47f   : > { %s5075_s29 = smov %s5066_s11 }
 0x482   :  { %3036 = vsyncpa [#allocation5], 1 }
 0x483   :  { %3038 = vsyncpa [#allocation5 + $0x1], 1 }

</bundles_post_ra>
